<compile_context>
chip_gen: v7x
topology: tpu7x:2x2x1
jax: 0.10.0
libtpu: 0.0.40
codegen_flags: <defaults>
</compile_context>

<pallas_src>
import jax
import jax.numpy as jnp
from jax.experimental import pallas as pl
from jax.experimental.pallas import tpu as pltpu

NUM_CLASSES = 10
NUM_LAYERS = 1              # module default; combine input = 64 * (2 + 1) = 192
TILE_M = 128                # batch rows per grid step (MXU-height tile)

# ---- fused-MLP geometry (all offsets static) -------------------------------
X_WIDTH = 40                # packed input row: l@[0:10], o@[16:26], c@[32]
O_L, O_O, O_C = 0, 16, 32   # input lane offsets of l / o / c
H1 = 256                    # hidden-1 lanes: h_l@[0:128], h_o@[128:228], h_c@[228:238]
HL_OFF, HO_OFF, HC_OFF = 0, 128, 228
H2 = 192                    # hidden-2 lanes: out_l@[0:64], out_o@[64:128], out_c@[128:192]

# ---- slab S256 (width 256) row offsets --------------------------------------
R_W1F = 0                   # (40, 256)  fused branch layer 1
R_W3C = 40                  # (192, 256) combine layer 1 (rows permuted)
R_B1F = 232                 # (1, 256)
R_B2F = 233                 # (1, 192)
R_B3C = 234                 # (1, 256)
R_B4C = 235                 # (1, 128)
R_B5C = 236                 # (1, 64)
R_W6C = 237                 # (1, 64)   final Linear(64,1) weight stored as a row
R_B6C = 238                 # (1, 1)
S256_ROWS = 240

# ---- slab S192 (width 192) row offsets --------------------------------------
R_W2F = 0                   # (256, 192) fused branch layer 2
R_DEEP = 256                # rows 256:512 cols 0:128 = combine L2 (256,128)
                            # rows 256:384 cols 128:192 = combine L3 (128,64)
S192_ROWS = 512


def attack_mlp_kernel(x_ref, s256_ref, s192_ref, out_ref):
    f32 = jnp.float32
    relu = lambda v: jnp.maximum(v, 0.0)

    # Static views into the two resident weight slabs (no runtime cost).
    w1f = s256_ref[R_W1F:R_W1F + X_WIDTH, :]        # (40, 256)
    w3c = s256_ref[R_W3C:R_W3C + H2, :]             # (192, 256)
    b1f = s256_ref[R_B1F:R_B1F + 1, :]              # (1, 256)
    b2f = s256_ref[R_B2F:R_B2F + 1, 0:H2]           # (1, 192)
    b3c = s256_ref[R_B3C:R_B3C + 1, :]              # (1, 256)
    b4c = s256_ref[R_B4C:R_B4C + 1, 0:128]          # (1, 128)
    b5c = s256_ref[R_B5C:R_B5C + 1, 0:64]           # (1, 64)
    w6c = s256_ref[R_W6C:R_W6C + 1, 0:64]           # (1, 64)
    b6c = s256_ref[R_B6C:R_B6C + 1, 0:1]            # (1, 1)

    w2f = s192_ref[R_W2F:R_W2F + H1, :]             # (256, 192)
    w4c = s192_ref[R_DEEP:R_DEEP + H1, 0:128]       # (256, 128)
    w5c = s192_ref[R_DEEP:R_DEEP + 128, 128:H2]     # (128, 64)

    x = x_ref[...]                                                  # (T, 40)
    h = relu(jnp.dot(x, w1f, preferred_element_type=f32) + b1f)     # (T, 256) [h_l|h_o|h_c|0]
    h = relu(jnp.dot(h, w2f, preferred_element_type=f32) + b2f)     # (T, 192) [out_l|out_o|out_c]
    h = relu(jnp.dot(h, w3c, preferred_element_type=f32) + b3c)     # (T, 256) combine L1
    h = relu(jnp.dot(h, w4c, preferred_element_type=f32) + b4c)     # (T, 128) combine L2
    h = relu(jnp.dot(h, w5c, preferred_element_type=f32) + b5c)     # (T, 64)  combine L3
    logit = jnp.sum(h * w6c, axis=-1, keepdims=True) + b6c          # (T, 1)   VPU mul + XLU reduce
    out_ref[...] = jax.nn.sigmoid(logit)


def init_params(key, num_classes=NUM_CLASSES):
    """PyTorch-equivalent params: N(0, 0.01) weights, zero biases.

    Weights stored transposed to (in, out); biases as (1, out). preds2/preds3
    are initialized for module fidelity even though they are dead for
    num_layers == 1.
    """
    dims = [
        ("labels", num_classes, 128), ("labels", 128, 64),
        ("correct", 1, num_classes), ("correct", num_classes, 64),
        ("preds", num_classes, 100), ("preds", 100, 64),
        ("preds2", 256, 100), ("preds2", 100, 64),
        ("preds3", 1024, 100), ("preds3", 100, 64),
        ("combine", 64 * (2 + NUM_LAYERS), 256), ("combine", 256, 128),
        ("combine", 128, 64), ("combine", 64, 1),
    ]
    keys = jax.random.split(key, len(dims))
    params = []
    for k, (_, din, dout) in zip(keys, dims):
        w = 0.01 * jax.random.normal(k, (din, dout), dtype=jnp.float32)
        b = jnp.zeros((1, dout), dtype=jnp.float32)
        params.append((w, b))
    return params


def pack_params(params, num_classes=NUM_CLASSES):
    """Build the two weight slabs. Block-diagonal zeros are exact: padded
    activation lanes are always 0 (zero weight cols, zero bias, ReLU(0)=0)."""
    nc = num_classes
    (lw1, lb1), (lw2, lb2) = params[0], params[1]
    (cw1, cb1), (cw2, cb2) = params[2], params[3]
    (ow1, ob1), (ow2, ob2) = params[4], params[5]
    (mw1, mb1), (mw2, mb2), (mw3, mb3), (mw4, mb4) = params[10:14]

    # Fused branch layer 1: x(40) -> [h_l | h_o | h_c] (256)
    w1f = jnp.zeros((X_WIDTH, H1), jnp.float32)
    w1f = w1f.at[O_L:O_L + nc, HL_OFF:HL_OFF + 128].set(lw1)
    w1f = w1f.at[O_O:O_O + nc, HO_OFF:HO_OFF + 100].set(ow1)
    w1f = w1f.at[O_C:O_C + 1, HC_OFF:HC_OFF + nc].set(cw1)
    b1f = jnp.zeros((H1,), jnp.float32)
    b1f = b1f.at[HL_OFF:HL_OFF + 128].set(lb1[0])
    b1f = b1f.at[HO_OFF:HO_OFF + 100].set(ob1[0])
    b1f = b1f.at[HC_OFF:HC_OFF + nc].set(cb1[0])

    # Fused branch layer 2: (256) -> [out_l | out_o | out_c] (192)
    w2f = jnp.zeros((H1, H2), jnp.float32)
    w2f = w2f.at[HL_OFF:HL_OFF + 128, 0:64].set(lw2)
    w2f = w2f.at[HO_OFF:HO_OFF + 100, 64:128].set(ow2)
    w2f = w2f.at[HC_OFF:HC_OFF + nc, 128:192].set(cw2)
    b2f = jnp.concatenate([lb2[0], ob2[0], cb2[0]])

    # Combine layer 1: PyTorch order cat(out_c, out_l, out_o) -> permute rows to
    # our [out_l | out_o | out_c] lane order.
    w3c = jnp.concatenate([mw1[64:128], mw1[128:192], mw1[0:64]], axis=0)

    s256 = jnp.zeros((S256_ROWS, H1), jnp.float32)
    s256 = s256.at[R_W1F:R_W1F + X_WIDTH].set(w1f)
    s256 = s256.at[R_W3C:R_W3C + H2].set(w3c)
    s256 = s256.at[R_B1F].set(b1f)
    s256 = s256.at[R_B2F, 0:H2].set(b2f)
    s256 = s256.at[R_B3C].set(mb1[0])
    s256 = s256.at[R_B4C, 0:128].set(mb2[0])
    s256 = s256.at[R_B5C, 0:64].set(mb3[0])
    s256 = s256.at[R_W6C, 0:64].set(mw4[:, 0])
    s256 = s256.at[R_B6C, 0:1].set(mb4[0])

    s192 = jnp.zeros((S192_ROWS, H2), jnp.float32)
    s192 = s192.at[R_W2F:R_W2F + H1].set(w2f)
    s192 = s192.at[R_DEEP:R_DEEP + H1, 0:128].set(mw2)
    s192 = s192.at[R_DEEP:R_DEEP + 128, 128:H2].set(mw3)
    return s256, s192


def inference_attack_forward(l, c, o, l1, l2, params):
    # preds2(l1) / preds3(l2) are computed-but-unused in the PyTorch forward for
    # num_layers == 1, so they are dead code and intentionally not run.
    # The 3-way fused combine split below is only valid for num_layers == 1.
    assert NUM_LAYERS == 1
    del l1, l2
    batch, nc = l.shape

    s256, s192 = pack_params(params, nc)

    num_tiles = pl.cdiv(batch, TILE_M)
    b_pad = num_tiles * TILE_M
    x = jnp.zeros((b_pad, X_WIDTH), jnp.float32)
    x = x.at[:batch, O_L:O_L + nc].set(l)
    x = x.at[:batch, O_O:O_O + nc].set(o)
    x = x.at[:batch, O_C:O_C + 1].set(c)

    macs = X_WIDTH * H1 + H1 * H2 + H2 * 256 + 256 * 128 + 128 * 64 + 64
    cost = pl.CostEstimate(
        flops=2 * b_pad * macs,
        transcendentals=b_pad,
        bytes_accessed=4 * (x.size + s256.size + s192.size + b_pad))

    out = pl.pallas_call(
        attack_mlp_kernel,
        out_shape=jax.ShapeDtypeStruct((b_pad, 1), jnp.float32),
        grid=(num_tiles,),
        in_specs=[
            pl.BlockSpec((TILE_M, X_WIDTH), lambda i: (i, 0)),   # streamed activations
            pl.BlockSpec((S256_ROWS, H1), lambda i: (0, 0)),     # resident weight slab
            pl.BlockSpec((S192_ROWS, H2), lambda i: (0, 0)),     # resident weight slab
        ],
        out_specs=pl.BlockSpec((TILE_M, 1), lambda i: (i, 0)),
        compiler_params=pltpu.CompilerParams(
            dimension_semantics=("parallel",)),
        cost_estimate=cost,
    )(x, s256, s192)
    return out[:batch]


def reference_forward(l, c, o, l1, l2, params):
    def mlp2(x, p1, p2):
        h = jnp.maximum(x @ p1[0] + p1[1], 0.0)
        return jnp.maximum(h @ p2[0] + p2[1], 0.0)

    out_l = mlp2(l, params[0], params[1])
    out_c = mlp2(c, params[2], params[3])
    out_o = mlp2(o, params[4], params[5])
    _ = mlp2(l1, params[6], params[7])   # dead (num_layers=1), kept for fidelity
    _ = mlp2(l2, params[8], params[9])   # dead (num_layers=1), kept for fidelity
    outs = jnp.concatenate([out_c, out_l, out_o], axis=1)
    h = jnp.maximum(outs @ params[10][0] + params[10][1], 0.0)
    h = jnp.maximum(h @ params[11][0] + params[11][1], 0.0)
    h = jnp.maximum(h @ params[12][0] + params[12][1], 0.0)
    return jax.nn.sigmoid(h @ params[13][0] + params[13][1])


if __name__ == "__main__":
    key = jax.random.PRNGKey(0)
    k_in, k_par = jax.random.split(key)
    kl, kc, ko, k1, k2 = jax.random.split(k_in, 5)

    B = 256  # 2 batch tiles of 128 -> exercises the grid + resident weights
    l = jax.random.normal(kl, (B, NUM_CLASSES), dtype=jnp.float32)   # labels
    c = jax.random.normal(kc, (B, 1), dtype=jnp.float32)             # correctness scalar
    o = jax.random.normal(ko, (B, NUM_CLASSES), dtype=jnp.float32)   # model output probs
    l1 = jax.random.normal(k1, (B, 256), dtype=jnp.float32)          # intermediate 1 (dead)
    l2 = jax.random.normal(k2, (B, 1024), dtype=jnp.float32)         # intermediate 2 (dead)

    params = init_params(k_par)

    out = jax.block_until_ready(inference_attack_forward(l, c, o, l1, l2, params))
    ref = reference_forward(l, c, o, l1, l2, params)

    assert out.shape == (B, 1)
    assert jnp.allclose(out, ref, atol=1e-5, rtol=1e-5)
    print("KERNEL_OK")
</pallas_src>

<mosaic_0001>
module attributes {stable_mosaic.version = 11 : i64} {
  func.func @attack_mlp_kernel(%arg0: i32, %arg1: memref<128x40xf32, #tpu.memory_space<vmem>>, %arg2: memref<240x256xf32, #tpu.memory_space<vmem>>, %arg3: memref<512x192xf32, #tpu.memory_space<vmem>>, %arg4: memref<128x1xf32, #tpu.memory_space<vmem>>) attributes {dimension_semantics = [#tpu.dimension_semantics<parallel>], iteration_bounds = array<i64: 2>, scalar_prefetch = 0 : i64, scratch_operands = 0 : i64, tpu.core_type = #tpu.core_type<tc>, window_params = [{transform_indices = @transform_0, window_bounds = array<i64: 128, 40>}, {pipeline_mode = #tpu.pipeline_mode<synchronous>, transform_indices = @transform_1, window_bounds = array<i64: 240, 256>}, {pipeline_mode = #tpu.pipeline_mode<synchronous>, transform_indices = @transform_2, window_bounds = array<i64: 512, 192>}, {transform_indices = @transform_3, window_bounds = array<i64: 128, 1>}]} {
    %c0 = arith.constant 0 : index
    %c0_0 = arith.constant 0 : index
    %0 = vector.load %arg2[%c0, %c0_0] : memref<240x256xf32, #tpu.memory_space<vmem>>, vector<40x256xf32>
    %c40 = arith.constant 40 : index
    %c0_1 = arith.constant 0 : index
    %1 = vector.load %arg2[%c40, %c0_1] : memref<240x256xf32, #tpu.memory_space<vmem>>, vector<192x256xf32>
    %c232 = arith.constant 232 : index
    %c0_2 = arith.constant 0 : index
    %2 = vector.load %arg2[%c232, %c0_2] : memref<240x256xf32, #tpu.memory_space<vmem>>, vector<1x256xf32>
    %c233 = arith.constant 233 : index
    %c0_3 = arith.constant 0 : index
    %3 = vector.load %arg2[%c233, %c0_3] : memref<240x256xf32, #tpu.memory_space<vmem>>, vector<1x192xf32>
    %c234 = arith.constant 234 : index
    %c0_4 = arith.constant 0 : index
    %4 = vector.load %arg2[%c234, %c0_4] : memref<240x256xf32, #tpu.memory_space<vmem>>, vector<1x256xf32>
    %c235 = arith.constant 235 : index
    %c0_5 = arith.constant 0 : index
    %5 = vector.load %arg2[%c235, %c0_5] : memref<240x256xf32, #tpu.memory_space<vmem>>, vector<1x128xf32>
    %c236 = arith.constant 236 : index
    %c0_6 = arith.constant 0 : index
    %6 = vector.load %arg2[%c236, %c0_6] : memref<240x256xf32, #tpu.memory_space<vmem>>, vector<1x64xf32>
    %c237 = arith.constant 237 : index
    %c0_7 = arith.constant 0 : index
    %7 = vector.load %arg2[%c237, %c0_7] : memref<240x256xf32, #tpu.memory_space<vmem>>, vector<1x64xf32>
    %c238 = arith.constant 238 : index
    %c0_8 = arith.constant 0 : index
    %8 = vector.load %arg2[%c238, %c0_8] : memref<240x256xf32, #tpu.memory_space<vmem>>, vector<1x1xf32>
    %c0_9 = arith.constant 0 : index
    %c0_10 = arith.constant 0 : index
    %9 = vector.load %arg3[%c0_9, %c0_10] : memref<512x192xf32, #tpu.memory_space<vmem>>, vector<256x192xf32>
    %c256 = arith.constant 256 : index
    %c0_11 = arith.constant 0 : index
    %10 = vector.load %arg3[%c256, %c0_11] : memref<512x192xf32, #tpu.memory_space<vmem>>, vector<256x128xf32>
    %c256_12 = arith.constant 256 : index
    %c128 = arith.constant 128 : index
    %11 = vector.load %arg3[%c256_12, %c128] : memref<512x192xf32, #tpu.memory_space<vmem>>, vector<128x64xf32>
    %c0_13 = arith.constant 0 : index
    %c0_14 = arith.constant 0 : index
    %12 = vector.load %arg1[%c0_13, %c0_14] : memref<128x40xf32, #tpu.memory_space<vmem>>, vector<128x40xf32>
    %cst = arith.constant dense<0.000000e+00> : vector<128x256xf32>
    %13 = tpu.matmul %12, %0, %cst {dimension_numbers = #tpu.dot_dimension_numbers<[1], [0], [0], [1], [0, 0, 1, 1], [], []>} : vector<128x40xf32>, vector<40x256xf32>, vector<128x256xf32> -> vector<128x256xf32>
    %14 = vector.broadcast %2 : vector<1x256xf32> to vector<128x256xf32>
    %15 = arith.addf %13, %14 : vector<128x256xf32>
    %cst_15 = arith.constant 0.000000e+00 : f32
    %16 = vector.broadcast %cst_15 : f32 to vector<128x256xf32>
    %17 = arith.maximumf %15, %16 : vector<128x256xf32>
    %cst_16 = arith.constant dense<0.000000e+00> : vector<128x192xf32>
    %18 = tpu.matmul %17, %9, %cst_16 {dimension_numbers = #tpu.dot_dimension_numbers<[1], [0], [0], [1], [0, 0, 1, 1], [], []>} : vector<128x256xf32>, vector<256x192xf32>, vector<128x192xf32> -> vector<128x192xf32>
    %19 = vector.broadcast %3 : vector<1x192xf32> to vector<128x192xf32>
    %20 = arith.addf %18, %19 : vector<128x192xf32>
    %cst_17 = arith.constant 0.000000e+00 : f32
    %21 = vector.broadcast %cst_17 : f32 to vector<128x192xf32>
    %22 = arith.maximumf %20, %21 : vector<128x192xf32>
    %cst_18 = arith.constant dense<0.000000e+00> : vector<128x256xf32>
    %23 = tpu.matmul %22, %1, %cst_18 {dimension_numbers = #tpu.dot_dimension_numbers<[1], [0], [0], [1], [0, 0, 1, 1], [], []>} : vector<128x192xf32>, vector<192x256xf32>, vector<128x256xf32> -> vector<128x256xf32>
    %24 = vector.broadcast %4 : vector<1x256xf32> to vector<128x256xf32>
    %25 = arith.addf %23, %24 : vector<128x256xf32>
    %cst_19 = arith.constant 0.000000e+00 : f32
    %26 = vector.broadcast %cst_19 : f32 to vector<128x256xf32>
    %27 = arith.maximumf %25, %26 : vector<128x256xf32>
    %cst_20 = arith.constant dense<0.000000e+00> : vector<128x128xf32>
    %28 = tpu.matmul %27, %10, %cst_20 {dimension_numbers = #tpu.dot_dimension_numbers<[1], [0], [0], [1], [0, 0, 1, 1], [], []>} : vector<128x256xf32>, vector<256x128xf32>, vector<128x128xf32> -> vector<128x128xf32>
    %29 = vector.broadcast %5 : vector<1x128xf32> to vector<128x128xf32>
    %30 = arith.addf %28, %29 : vector<128x128xf32>
    %cst_21 = arith.constant 0.000000e+00 : f32
    %31 = vector.broadcast %cst_21 : f32 to vector<128x128xf32>
    %32 = arith.maximumf %30, %31 : vector<128x128xf32>
    %cst_22 = arith.constant dense<0.000000e+00> : vector<128x64xf32>
    %33 = tpu.matmul %32, %11, %cst_22 {dimension_numbers = #tpu.dot_dimension_numbers<[1], [0], [0], [1], [0, 0, 1, 1], [], []>} : vector<128x128xf32>, vector<128x64xf32>, vector<128x64xf32> -> vector<128x64xf32>
    %34 = vector.broadcast %6 : vector<1x64xf32> to vector<128x64xf32>
    %35 = arith.addf %33, %34 : vector<128x64xf32>
    %cst_23 = arith.constant 0.000000e+00 : f32
    %36 = vector.broadcast %cst_23 : f32 to vector<128x64xf32>
    %37 = arith.maximumf %35, %36 : vector<128x64xf32>
    %38 = vector.broadcast %7 : vector<1x64xf32> to vector<128x64xf32>
    %39 = arith.mulf %37, %38 : vector<128x64xf32>
    %cst_24 = arith.constant dense<0.000000e+00> : vector<128xf32>
    %40 = vector.multi_reduction <add>, %39, %cst_24 [1] : vector<128x64xf32> to vector<128xf32>
    %41 = vector.shape_cast %40 : vector<128xf32> to vector<128x1xf32>
    %42 = vector.broadcast %8 : vector<1x1xf32> to vector<128x1xf32>
    %43 = arith.addf %41, %42 : vector<128x1xf32>
    %44 = arith.negf %43 : vector<128x1xf32>
    %45 = math.exp %44 : vector<128x1xf32>
    %cst_25 = arith.constant 1.000000e+00 : f32
    %46 = vector.broadcast %cst_25 : f32 to vector<128x1xf32>
    %47 = arith.addf %46, %45 : vector<128x1xf32>
    %48 = arith.divf %46, %47 : vector<128x1xf32>
    %c0_26 = arith.constant 0 : index
    %c0_27 = arith.constant 0 : index
    %49 = vector.load %arg4[%c0_26, %c0_27] : memref<128x1xf32, #tpu.memory_space<vmem>>, vector<128x1xf32>
    tpu.vector_store %arg4[%c0_26, %c0_27], %48 {strides = array<i32>} : memref<128x1xf32, #tpu.memory_space<vmem>>, vector<128x1xf32>,
    return
  }
  func.func @transform_0(%arg0: i32) -> (i32, i32) {
    %c0_i32 = arith.constant 0 : i32
    %c0_i32_0 = arith.constant 0 : i32
    return %arg0, %c0_i32 : i32, i32
  }
  func.func @transform_1(%arg0: i32) -> (i32, i32) {
    %c0_i32 = arith.constant 0 : i32
    %c0_i32_0 = arith.constant 0 : i32
    %c0_i32_1 = arith.constant 0 : i32
    return %c0_i32, %c0_i32_0 : i32, i32
  }
  func.func @transform_2(%arg0: i32) -> (i32, i32) {
    %c0_i32 = arith.constant 0 : i32
    %c0_i32_0 = arith.constant 0 : i32
    %c0_i32_1 = arith.constant 0 : i32
    return %c0_i32, %c0_i32_0 : i32, i32
  }
  func.func @transform_3(%arg0: i32) -> (i32, i32) {
    %c0_i32 = arith.constant 0 : i32
    %c0_i32_0 = arith.constant 0 : i32
    return %arg0, %c0_i32 : i32, i32
  }
}

</mosaic_0001>

<bundles_post_ra>
// kernel: tpu_custom_call.1
= control target key start
LH: loop header
LB: loop body
LE: loop exit
PB: predicated region body
PF: predicated region fallthrough
CT: control target
= control target key end

     0   :  { %s2167_s12 = smov 0   ;;  %s3028_s0 = inlined_call_operand.vmem [shape: f32[256,40], index: 0, kind: input, shape index: {}]   ;;  %s3029_s1 = inlined_call_operand.vmem [shape: f32[240,256], index: 1, kind: input, shape index: {}]   ;;  %s3030_s2 = inlined_call_operand.vmem [shape: f32[512,192], index: 2, kind: input, shape index: {}]   ;;  %s3031_s3 = inlined_call_operand.vmem [shape: f32[256,1], index: 3, kind: output, shape index: {}]  }
   0x1 LB: > { %s1651_s13 = sadd.s32 4294967295, %s2144_s12   ;;  %p1655_p0 = scmp.ge.s32.totalorder %s2144_s12, 1  ;;  %s2144_s12 = sphi %s2167_s12, %s13_s12  }
   0x2   : > { %p138_p1 = scmp.lt.s32.totalorder %s2144_s12, 3 }
   0x4   : > { %p139_p2 = pnand %p1655_p0, %p138_p1 }
   0x5   : > { %v175_v0 = vld [vmem:[%s3029_s1 + $0x8] sm:$0xff] (!%p139_p2)  ;;  %v177_v1 = vld [vmem:[%s3029_s1 + $0x18] sm:$0xff] (!%p139_p2)  ;;  %v174_v2 = vld [vmem:[%s3029_s1] sm:$0xff] (!%p139_p2)  ;;  %s1656_s20 = sshll.u32 (!%p139_p2), %s1651_s13, 4  ;;  %v2146_v7 = vmov (!%p139_p2), 0.0   ;;  %vm381_vm0 = vcmask (!%p139_p2), 326656  }
   0x6   : > { %142 = sbr.rel (%p139_p2) target bundleno = 1342 (0x53e), region = 32  ;;  %v1881_v3 = vpack.c.bf16 (!%p139_p2), %v177_v1, %v175_v0  ;;  %v176_v4 = vld [vmem:[%s3029_s1 + $0x10] sm:$0xff] (!%p139_p2)  ;;  %v179_v5 = vld [vmem:[%s3029_s1 + $0x28] sm:$0xff] (!%p139_p2)  ;;  %v181_v6 = vld [vmem:[%s3029_s1 + $0x38] sm:$0xff] (!%p139_p2)  ;;  %494 = vmatprep.mubr.f32.mxu0 (!%p139_p2), %v2146_v7  ;;  %p163_p3 = scmp.lt.s32.totalorder (!%p139_p2), %s1656_s20, 31  ;;  %vm838_vm1 = vcmask (!%p139_p2), 523264  }
   0x7   : > { %v1883_v8 = vpack.c.bf16 (!%p139_p2), %v176_v4, %v174_v2  ;;  %v1885_v9 = vpack.c.bf16 (!%p139_p2), %v181_v6, %v179_v5  ;;  %v178_v10 = vld [vmem:[%s3029_s1 + $0x20] sm:$0xff] (!%p139_p2)  ;;  %v180_v11 = vld [vmem:[%s3029_s1 + $0x30] sm:$0xff] (!%p139_p2)  ;;  %v243_v12 = vld [vmem:[%s3030_s2 + $0x8] sm:$0xff] (!%p139_p2)  ;;  %vm1578_vm2 = vcmask (!%p139_p2), 7168  }
   0x8   : > { %1882 = vmatprep.subr.bf16.mxu0 (!%p139_p2), %v1881_v3  ;;  %v245_v13 = vld [vmem:[%s3030_s2 + $0x18] sm:$0xff] (!%p139_p2)  ;;  %v1887_v14 = vpack.c.bf16 (!%p139_p2), %v180_v11, %v178_v10  ;;  %v242_v16 = vld [vmem:[%s3030_s2] sm:$0xff] (!%p139_p2)  ;;  %v244_v17 = vld [vmem:[%s3030_s2 + $0x10] sm:$0xff] (!%p139_p2) }
   0x9   : > { %1884 = vmatpush1.bf16.msra.mxu0 (!%p139_p2), %v1883_v8  ;;  %v1889_v15 = vpack.c.bf16 (!%p139_p2), %v245_v13, %v243_v12  ;;  %v247_v18 = vld [vmem:[%s3030_s2 + $0x28] sm:$0xff] (!%p139_p2)  ;;  %v1891_v19 = vpack.c.bf16 (!%p139_p2), %v244_v17, %v242_v16  ;;  %v249_v20 = vld [vmem:[%s3030_s2 + $0x38] sm:$0xff] (!%p139_p2)  ;;  %v246_v21 = vld [vmem:[%s3030_s2 + $0x20] sm:$0xff] (!%p139_p2) }
   0xa   : > { %1886 = vmatprep.subr.bf16.mxu0 (!%p139_p2), %v1885_v9  ;;  %v248_v22 = vld [vmem:[%s3030_s2 + $0x30] sm:$0xff] (!%p139_p2)  ;;  %v183_v23 = vld [vmem:[%s3029_s1 + $0x48] sm:$0xff] (!%p139_p2)  ;;  %v1893_v24 = vpack.c.bf16 (!%p139_p2), %v249_v20, %v247_v18  ;;  %v253_v26 = vld [vmem:[%s3030_s2 + $0x58] sm:$0xff] (!%p139_p2) }
   0xb   : > { %1890 = vmatprep.subr.bf16.mxu1 (!%p139_p2), %v1889_v15  ;;  %v251_v25 = vld [vmem:[%s3030_s2 + $0x48] sm:$0xff] (!%p139_p2)  ;;  %v1895_v27 = vpack.c.bf16 (!%p139_p2), %v248_v22, %v246_v21  ;;  %v182_v29 = vld [vmem:[%s3029_s1 + $0x40] sm:$0xff] (!%p139_p2)  ;;  %v252_v32 = vld [vmem:[%s3030_s2 + $0x50] sm:$0xff] (!%p139_p2) }
   0xc   : > { %1892 = vmatpush1.bf16.msra.mxu1 (!%p139_p2), %v1891_v19  ;;  %v1897_v28 = vpack.c.bf16 (!%p139_p2), %v253_v26, %v251_v25  ;;  %v250_v31 = vld [vmem:[%s3030_s2 + $0x40] sm:$0xff] (!%p139_p2)  ;;  %v255_v33 = vld [vmem:[%s3030_s2 + $0x68] sm:$0xff] (!%p139_p2)  ;;  %v257_v35 = vld [vmem:[%s3030_s2 + $0x78] sm:$0xff] (!%p139_p2) }
   0xd   : > { %s3033_s20 = smov (!%p163_p3, %s1656_s20), 31  ;;  %1888 = vmatpush1.bf16.msra.mxu0 %v1887_v14  ;;  %1894 = vmatprep.subr.bf16.mxu1 %v1893_v24  ;;  %v1899_v34 = vpack.c.bf16 %v252_v32, %v250_v31  ;;  %v254_v36 = vld [vmem:[%s3030_s2 + $0x60] sm:$0xff]  ;;  %v256_v37 = vld [vmem:[%s3030_s2 + $0x70] sm:$0xff]  ;;  %v1901_v39 = vpack.c.bf16 %v257_v35, %v255_v33  ;;  %v259_v40 = vld [vmem:[%s3030_s2 + $0x88] sm:$0xff] }
   0xe   : > { %s1657_s15 = sshll.u32 %s3033_s20, 3  ;;  %438 = vmatprep.subr.mxu0 %v183_v23  ;;  %v261_v41 = vld [vmem:[%s3030_s2 + $0x98] sm:$0xff]  ;;  %v1903_v42 = vpack.c.bf16 %v256_v37, %v254_v36  ;;  %v258_v44 = vld [vmem:[%s3030_s2 + $0x80] sm:$0xff]  ;;  %v260_v45 = vld [vmem:[%s3030_s2 + $0x90] sm:$0xff] }
   0xf   : > { %s2241_s4 = scalar_lea.vmem %s3028_s0, %s1657_s15  ;;  %v1905_v43 = vpack.c.bf16 %v261_v41, %v259_v40  ;;  %v263_v46 = vld [vmem:[%s3030_s2 + $0xa8] sm:$0xff]  ;;  %v265_v47 = vld [vmem:[%s3030_s2 + $0xb8] sm:$0xff]  ;;  %v1907_v49 = vpack.c.bf16 %v260_v45, %v258_v44  ;;  %v262_v51 = vld [vmem:[%s3030_s2 + $0xa0] sm:$0xff]  ;;  %s2982_s17 = scalar_lea.vmem %s3031_s3, %s1657_s15 }
  0x10   : > { %v354_v30 = vld [vmem:[%s2241_s4] sm:$0xff]  ;;  %1896 = vmatpush1.bf16.msra.mxu1 %v1895_v27  ;;  %v355_v38 = vld [vmem:[%s2241_s4 + $0x8] sm:$0xff]  ;;  %v356_v48 = vld [vmem:[%s2241_s4 + $0x10] sm:$0xff]  ;;  %v1909_v50 = vpack.c.bf16 %v265_v47, %v263_v46 }
  0x11   : > { %439 = vmatpush1.msra.mxu0 %v182_v29  ;;  %1898 = vmatprep.subr.bf16.mxu1 %v1897_v28  ;;  %v264_v52 = vld [vmem:[%s3030_s2 + $0xb0] sm:$0xff]  ;;  %v267_v53 = vld [vmem:[%s3030_s2 + $0xc8] sm:$0xff]  ;;  %v269_v54 = vld [vmem:[%s3030_s2 + $0xd8] sm:$0xff] }
  0x12   : > { %1663 = vmatmul.mubr.msk.f32.vlgmr.msra.gmra.mrb[0].mxu0 %vm381_vm0, %v354_v30  ;;  %v357_v55 = vld [vmem:[%s2241_s4 + $0x18] sm:$0xff]  ;;  %v1911_v56 = vpack.c.bf16 %v264_v52, %v262_v51  ;;  %v1913_v57 = vpack.c.bf16 %v269_v54, %v267_v53  ;;  %v266_v58 = vld [vmem:[%s3030_s2 + $0xc0] sm:$0xff]  ;;  %v268_v59 = vld [vmem:[%s3030_s2 + $0xd0] sm:$0xff] }
  0x13   : > { %500 = vmatprep.mubr.f32.mxu0 %v2146_v7  ;;  %v271_v60 = vld [vmem:[%s3030_s2 + $0xe8] sm:$0xff]  ;;  %v273_v61 = vld [vmem:[%s3030_s2 + $0xf8] sm:$0xff]  ;;  %v358_v62 = vld [vmem:[%s2241_s4 + $0x20] sm:$0xff]  ;;  %v1915_v63 = vpack.c.bf16 %v268_v59, %v266_v58 }
  0x14   : > { %1900 = vmatpush1.bf16.msra.mxu1 %v1899_v34  ;;  %v1917_v0 = vpack.c.bf16 %v273_v61, %v271_v60  ;;  %v270_v1 = vld [vmem:[%s3030_s2 + $0xe0] sm:$0xff]  ;;  %v272_v2 = vld [vmem:[%s3030_s2 + $0xf0] sm:$0xff]  ;;  %v275_v3 = vld [vmem:[%s3030_s2 + $0x108] sm:$0xff] }
  0x15   : > { %1902 = vmatprep.subr.bf16.mxu1 %v1901_v39  ;;  %v277_v4 = vld [vmem:[%s3030_s2 + $0x118] sm:$0xff]  ;;  %v359_v5 = vld [vmem:[%s2241_s4 + $0x28] sm:$0xff]  ;;  %v1919_v6 = vpack.c.bf16 %v272_v2, %v270_v1  ;;  %v274_v9 = vld [vmem:[%s3030_s2 + $0x100] sm:$0xff] }
  0x16   : > { %1664 = vmatmul.mubr.msk.f32.gmra.mrb[2].mxu0 %vm381_vm0, %v355_v38  ;;  %v1921_v8 = vpack.c.bf16 %v277_v4, %v275_v3  ;;  %v276_v10 = vld [vmem:[%s3030_s2 + $0x110] sm:$0xff]  ;;  %v279_v11 = vld [vmem:[%s3030_s2 + $0x128] sm:$0xff]  ;;  %v281_v12 = vld [vmem:[%s3030_s2 + $0x138] sm:$0xff] }
  0x17   : > { %506 = vmatprep.mubr.f32.mxu0 %v2146_v7  ;;  %v360_v13 = vld [vmem:[%s2241_s4 + $0x30] sm:$0xff]  ;;  %v1923_v14 = vpack.c.bf16 %v276_v10, %v274_v9  ;;  %v1925_v15 = vpack.c.bf16 %v281_v12, %v279_v11  ;;  %v278_v16 = vld [vmem:[%s3030_s2 + $0x120] sm:$0xff]  ;;  %v283_v18 = vld [vmem:[%s3030_s2 + $0x148] sm:$0xff] }
  0x18   : > { %1904 = vmatpush1.bf16.msra.mxu1 %v1903_v42  ;;  %v280_v17 = vld [vmem:[%s3030_s2 + $0x130] sm:$0xff]  ;;  %v285_v19 = vld [vmem:[%s3030_s2 + $0x158] sm:$0xff]  ;;  %v282_v23 = vld [vmem:[%s3030_s2 + $0x140] sm:$0xff] }
  0x19   : > { %1906 = vmatprep.subr.bf16.mxu1 %v1905_v43  ;;  %v361_v20 = vld [vmem:[%s2241_s4 + $0x38] sm:$0xff]  ;;  %v1927_v21 = vpack.c.bf16 %v280_v17, %v278_v16  ;;  %v1929_v22 = vpack.c.bf16 %v285_v19, %v283_v18  ;;  %v284_v24 = vld [vmem:[%s3030_s2 + $0x150] sm:$0xff]  ;;  %v287_v25 = vld [vmem:[%s3030_s2 + $0x168] sm:$0xff] }
  0x1a   : > { %1665 = vmatmul.mubr.msk.f32.gmra.mrb[4].mxu0 %vm381_vm0, %v356_v48  ;;  %v289_v26 = vld [vmem:[%s3030_s2 + $0x178] sm:$0xff]  ;;  %v362_v27 = vld [vmem:[%s2241_s4 + $0x40] sm:$0xff]  ;;  %v1931_v28 = vpack.c.bf16 %v284_v24, %v282_v23  ;;  %v288_v31 = vld [vmem:[%s3030_s2 + $0x170] sm:$0xff] }
  0x1b   : > { %512 = vmatprep.mubr.f32.mxu0 %v2146_v7  ;;  %v1933_v29 = vpack.c.bf16 %v289_v26, %v287_v25  ;;  %v286_v30 = vld [vmem:[%s3030_s2 + $0x160] sm:$0xff]  ;;  %v291_v32 = vld [vmem:[%s3030_s2 + $0x188] sm:$0xff]  ;;  %v293_v33 = vld [vmem:[%s3030_s2 + $0x198] sm:$0xff] }
  0x1c   : > { %1908 = vmatpush1.bf16.msra.mxu1 %v1907_v49  ;;  %v363_v34 = vld [vmem:[%s2241_s4 + $0x48] sm:$0xff]  ;;  %v1935_v35 = vpack.c.bf16 %v288_v31, %v286_v30  ;;  %v1937_v36 = vpack.c.bf16 %v293_v33, %v291_v32  ;;  %v290_v37 = vld [vmem:[%s3030_s2 + $0x180] sm:$0xff]  ;;  %v292_v38 = vld [vmem:[%s3030_s2 + $0x190] sm:$0xff] }
  0x1d   : > { %1910 = vmatprep.subr.bf16.mxu1 %v1909_v50  ;;  %v295_v39 = vld [vmem:[%s3030_s2 + $0x1a8] sm:$0xff]  ;;  %v297_v40 = vld [vmem:[%s3030_s2 + $0x1b8] sm:$0xff]  ;;  %v364_v41 = vld [vmem:[%s2241_s4 + $0x50] sm:$0xff]  ;;  %v1939_v42 = vpack.c.bf16 %v292_v38, %v290_v37 }
  0x1e   : > { %1666 = vmatmul.mubr.msk.f32.gmra.mrb[6].mxu0 %vm381_vm0, %v357_v55  ;;  %v1941_v43 = vpack.c.bf16 %v297_v40, %v295_v39  ;;  %v294_v44 = vld [vmem:[%s3030_s2 + $0x1a0] sm:$0xff]  ;;  %v296_v45 = vld [vmem:[%s3030_s2 + $0x1b0] sm:$0xff]  ;;  %v299_v46 = vld [vmem:[%s3030_s2 + $0x1c8] sm:$0xff] }
  0x1f   : > { %518 = vmatprep.mubr.f32.mxu0 %v2146_v7  ;;  %v301_v47 = vld [vmem:[%s3030_s2 + $0x1d8] sm:$0xff]  ;;  %v1943_v49 = vpack.c.bf16 %v296_v45, %v294_v44  ;;  %v366_v51 = vld [vmem:[%s2241_s4 + $0x60] sm:$0xff]  ;;  %v367_v52 = vld [vmem:[%s2241_s4 + $0x68] sm:$0xff] }
  0x20   : > { %1912 = vmatpush1.bf16.msra.mxu1 %v1911_v56  ;;  %v365_v48 = vld [vmem:[%s2241_s4 + $0x58] sm:$0xff]  ;;  %v1945_v50 = vpack.c.bf16 %v301_v47, %v299_v46  ;;  %v368_v53 = vld [vmem:[%s2241_s4 + $0x70] sm:$0xff]  ;;  %v298_v55 = vld [vmem:[%s3030_s2 + $0x1c0] sm:$0xff] }
  0x21   : > { %1914 = vmatprep.subr.bf16.mxu1 %v1913_v57  ;;  %v369_v54 = vld [vmem:[%s2241_s4 + $0x78] sm:$0xff]  ;;  %v300_v56 = vld [vmem:[%s3030_s2 + $0x1d0] sm:$0xff]  ;;  %v303_v58 = vld [vmem:[%s3030_s2 + $0x1e8] sm:$0xff] }
  0x22   : > { %1667 = vmatmul.mubr.msk.f32.gmra.mrb[8].mxu0 %vm381_vm0, %v358_v62  ;;  %v1947_v57 = vpack.c.bf16 %v300_v56, %v298_v55  ;;  %v302_v60 = vld [vmem:[%s3030_s2 + $0x1e0] sm:$0xff]  ;;  %v304_v61 = vld [vmem:[%s3030_s2 + $0x1f0] sm:$0xff]  ;;  %v189_v4 = vld [vmem:[%s3029_s1 + $0x78] sm:$0xff] }
  0x23   : > { %524 = vmatprep.mubr.f32.mxu0 %v2146_v7  ;;  %v1951_v62 = vpack.c.bf16 %v304_v61, %v302_v60  ;;  %v184_v1 = vld [vmem:[%s3029_s1 + $0x50] sm:$0xff]  ;;  %v186_v3 = vld [vmem:[%s3029_s1 + $0x60] sm:$0xff]  ;;  %v193_v11 = vld [vmem:[%s3029_s1 + $0x98] sm:$0xff] }
  0x24   : > { %1916 = vmatpush1.bf16.msra.mxu1 %v1915_v63  ;;  %v185_v63 = vld [vmem:[%s3029_s1 + $0x58] sm:$0xff]  ;;  %v188_v9 = vld [vmem:[%s3029_s1 + $0x70] sm:$0xff]  ;;  %v190_v10 = vld [vmem:[%s3029_s1 + $0x80] sm:$0xff] }
  0x25   : > { %1918 = vmatprep.subr.bf16.mxu1 %v1917_v0  ;;  %v187_v0 = vld [vmem:[%s3029_s1 + $0x68] sm:$0xff]  ;;  %v194_v16 = vld [vmem:[%s3029_s1 + $0xa0] sm:$0xff]  ;;  %v197_v17 = vld [vmem:[%s3029_s1 + $0xb8] sm:$0xff] }
  0x26   : > { %1668 = vmatmul.mubr.msk.f32.gmra.mrb[10].mxu0 %vm381_vm0, %v359_v5  ;;  %v1953_v2 = vpack.c.bf16 %v187_v0, %v185_v63  ;;  %v191_v5 = vld [vmem:[%s3029_s1 + $0x88] sm:$0xff]  ;;  %v201_v23 = vld [vmem:[%s3029_s1 + $0xd8] sm:$0xff]  ;;  %v204_v33 = vld [vmem:[%s3029_s1 + $0xf0] sm:$0xff] }
  0x27   : > { %530 = vmatprep.mubr.f32.mxu0 %v2146_v7  ;;  %v195_v12 = vld [vmem:[%s3029_s1 + $0xa8] sm:$0xff]  ;;  %v208_v39 = vld [vmem:[%s3029_s1 + $0x110] sm:$0xff]  ;;  %v210_v40 = vld [vmem:[%s3029_s1 + $0x120] sm:$0xff] }
  0x28   : > { %1920 = vmatpush1.bf16.msra.mxu1 %v1919_v6  ;;  %v1955_v6 = vpack.c.bf16 %v186_v3, %v184_v1  ;;  %1954 = vmatprep.subr.bf16.mxu0 %v1953_v2  ;;  %v199_v18 = vld [vmem:[%s3029_s1 + $0xc8] sm:$0xff]  ;;  %v212_v45 = vld [vmem:[%s3029_s1 + $0x130] sm:$0xff]  ;;  %v214_v46 = vld [vmem:[%s3029_s1 + $0x140] sm:$0xff]  ;;  %v371_v1 = vlaneseq }
  0x29   : > { %1922 = vmatprep.subr.bf16.mxu1 %v1921_v8  ;;  %v1957_v8 = vpack.c.bf16 %v191_v5, %v189_v4  ;;  %v203_v24 = vld [vmem:[%s3029_s1 + $0xe8] sm:$0xff]  ;;  %v217_v47 = vld [vmem:[%s3029_s1 + $0x158] sm:$0xff]  ;;  %v226_v63 = vld [vmem:[%s3029_s1 + $0x1a0] sm:$0xff] }
  0x2a   : > { %1669 = vmatmul.mubr.msk.f32.gmra.mrb[12].mxu0 %vm381_vm0, %v360_v13  ;;  %v1959_v13 = vpack.c.bf16 %v190_v10, %v188_v9  ;;  %v1969_v26 = vpack.c.bf16 %v203_v24, %v201_v23  ;;  %v207_v30 = vld [vmem:[%s3029_s1 + $0x108] sm:$0xff]  ;;  %v372_v2 = vshrl.u32 %v371_v1, 7  ;;  %v1660_v4 = vld [vmem:[%s3029_s1 + $0x1d0] ss:$8 sm:$0x3] }
  0x2b   : > { %536 = vmatprep.mubr.f32.mxu0 %v2146_v7  ;;  %1956 = vmatpush1.bf16.msra.mxu0 %v1955_v6 }
  0x2c   : > { %1924 = vmatpush1.bf16.msra.mxu1 %v1923_v14  ;;  %1958 = vmatprep.subr.bf16.mxu0 %v1957_v8  ;;  %v1961_v14 = vpack.c.bf16 %v195_v12, %v193_v11  ;;  %v2587_v3 = vsub.s32 0, %v372_v2  ;;  %v2592_v5 = vsub.s32 1, %v372_v2 }
  0x2d   : > { %1926 = vmatprep.subr.bf16.mxu1 %v1925_v15  ;;  %v192_v15 = vld [vmem:[%s3029_s1 + $0x90] sm:$0xff] }
  0x2e   : > { %1670 = vmatmul.mubr.msk.f32.gmra.mrb[14].mxu0 %vm381_vm0, %v361_v20  ;;  %v1963_v19 = vpack.c.bf16 %v194_v16, %v192_v15  ;;  %v1965_v20 = vpack.c.bf16 %v199_v18, %v197_v17  ;;  %v2595_v6 = vrot.slane %v1660_v4, %v2587_v3  ;;  %v2598_v8 = vrot.slane %v1660_v4, %v2592_v5 }
  0x2f   : > { %542 = vmatprep.mubr.f32.mxu0 %v2146_v7  ;;  %1960 = vmatpush1.bf16.msra.mxu0 %v1959_v13 }
  0x30   : > { %1928 = vmatpush1.bf16.msra.mxu1 %v1927_v21  ;;  %1962 = vmatprep.subr.bf16.mxu0 %v1961_v14  ;;  %v196_v21 = vld [vmem:[%s3029_s1 + $0xb0] sm:$0xff] }
  0x31   : > { %1930 = vmatprep.subr.bf16.mxu1 %v1929_v22  ;;  %v198_v22 = vld [vmem:[%s3029_s1 + $0xc0] sm:$0xff] }
  0x32   : > { %1671 = vmatmul.mubr.msk.f32.gmra.mrb[16].mxu0 %vm381_vm0, %v362_v27  ;;  %v1967_v25 = vpack.c.bf16 %v198_v22, %v196_v21  ;;  %v200_v27 = vld [vmem:[%s3029_s1 + $0xd0] sm:$0xff] }
  0x33   : > { %548 = vmatprep.mubr.f32.mxu0 %v2146_v7  ;;  %1964 = vmatpush1.bf16.msra.mxu0 %v1963_v19 }
  0x34   : > { %1932 = vmatpush1.bf16.msra.mxu1 %v1931_v28  ;;  %1966 = vmatprep.subr.bf16.mxu0 %v1965_v20  ;;  %v202_v28 = vld [vmem:[%s3029_s1 + $0xe0] sm:$0xff] }
  0x35   : > { %1934 = vmatprep.subr.bf16.mxu1 %v1933_v29  ;;  %v205_v29 = vld [vmem:[%s3029_s1 + $0xf8] sm:$0xff]  ;;  %v1971_v31 = vpack.c.bf16 %v202_v28, %v200_v27 }
  0x36   : > { %1672 = vmatmul.mubr.msk.f32.gmra.mrb[18].mxu0 %vm381_vm0, %v363_v34  ;;  %v1973_v32 = vpack.c.bf16 %v207_v30, %v205_v29  ;;  %v206_v34 = vld [vmem:[%s3029_s1 + $0x100] sm:$0xff] }
  0x37   : > { %554 = vmatprep.mubr.f32.mxu0 %v2146_v7  ;;  %1968 = vmatpush1.bf16.msra.mxu0 %v1967_v25  ;;  %v1975_v37 = vpack.c.bf16 %v206_v34, %v204_v33 }
  0x38   : > { %1936 = vmatpush1.bf16.msra.mxu1 %v1935_v35  ;;  %1970 = vmatprep.subr.bf16.mxu0 %v1969_v26  ;;  %v209_v35 = vld [vmem:[%s3029_s1 + $0x118] sm:$0xff] }
  0x39   : > { %1938 = vmatprep.subr.bf16.mxu1 %v1937_v36  ;;  %v211_v36 = vld [vmem:[%s3029_s1 + $0x128] sm:$0xff] }
  0x3a   : > { %1673 = vmatmul.mubr.msk.f32.gmra.mrb[20].mxu0 %vm381_vm0, %v364_v41  ;;  %v1977_v38 = vpack.c.bf16 %v211_v36, %v209_v35  ;;  %v213_v41 = vld [vmem:[%s3029_s1 + $0x138] sm:$0xff] }
  0x3b   : > { %560 = vmatprep.mubr.f32.mxu0 %v2146_v7  ;;  %1972 = vmatpush1.bf16.msra.mxu0 %v1971_v31 }
  0x3c   : > { %1940 = vmatpush1.bf16.msra.mxu1 %v1939_v42  ;;  %1974 = vmatprep.subr.bf16.mxu0 %v1973_v32  ;;  %v215_v42 = vld [vmem:[%s3029_s1 + $0x148] sm:$0xff] }
  0x3d   : > { %1942 = vmatprep.subr.bf16.mxu1 %v1941_v43  ;;  %v1979_v43 = vpack.c.bf16 %v210_v40, %v208_v39  ;;  %v1981_v44 = vpack.c.bf16 %v215_v42, %v213_v41 }
  0x3e   : > { %1674 = vmatmul.mubr.msk.f32.gmra.mrb[22].mxu0 %vm381_vm0, %v365_v48  ;;  %v219_v48 = vld [vmem:[%s3029_s1 + $0x168] sm:$0xff] }
  0x3f   : > { %566 = vmatprep.mubr.f32.mxu0 %v2146_v7  ;;  %1976 = vmatpush1.bf16.msra.mxu0 %v1975_v37 }
  0x40   : > { %1944 = vmatpush1.bf16.msra.mxu1 %v1943_v49  ;;  %1978 = vmatprep.subr.bf16.mxu0 %v1977_v38  ;;  %v1983_v49 = vpack.c.bf16 %v214_v46, %v212_v45 }
  0x41   : > { %1946 = vmatprep.subr.bf16.mxu1 %v1945_v50  ;;  %v1985_v50 = vpack.c.bf16 %v219_v48, %v217_v47 }
  0x42   : > { %1675 = vmatmul.mubr.msk.f32.gmra.mrb[24].mxu0 %vm381_vm0, %v366_v51  ;;  %v216_v51 = vld [vmem:[%s3029_s1 + $0x150] sm:$0xff] }
  0x43   : > { %572 = vmatprep.mubr.f32.mxu0 %v2146_v7  ;;  %1980 = vmatpush1.bf16.msra.mxu0 %v1979_v43 }
  0x44   : > { %1948 = vmatpush1.bf16.msra.mxu1 %v1947_v57  ;;  %1982 = vmatprep.subr.bf16.mxu0 %v1981_v44  ;;  %v220_v57 = vld [vmem:[%s3029_s1 + $0x170] sm:$0xff] }
  0x46   : > { %1676 = vmatmul.mubr.msk.f32.gmra.mrb[26].mxu0 %vm381_vm0, %v367_v52  ;;  %v218_v52 = vld [vmem:[%s3029_s1 + $0x160] sm:$0xff] }
  0x47   : > { %578 = vmatprep.mubr.f32.mxu0 %v2146_v7  ;;  %1984 = vmatpush1.bf16.msra.mxu0 %v1983_v49  ;;  %v1987_v55 = vpack.c.bf16 %v218_v52, %v216_v51 }
  0x48   : > { %1986 = vmatprep.subr.bf16.mxu0 %v1985_v50 }
  0x4a   : > { %1677 = vmatmul.mubr.msk.f32.gmra.mrb[28].mxu0 %vm381_vm0, %v368_v53  ;;  %v221_v53 = vld [vmem:[%s3029_s1 + $0x178] sm:$0xff] }
  0x4b   : > { %584 = vmatprep.mubr.f32.mxu0 %v2146_v7  ;;  %v305_v7 = vld [vmem:[%s3030_s2 + $0x1f8] sm:$0xff]  ;;  %1988 = vmatpush1.bf16.msra.mxu0 %v1987_v55 }
  0x4c   : > { %v1949_v59 = vpack.c.bf16 %v305_v7, %v303_v58  ;;  %v222_v58 = vld [vmem:[%s3029_s1 + $0x180] sm:$0xff]  ;;  %v225_v7 = vld [vmem:[%s3029_s1 + $0x198] sm:$0xff] }
  0x4d   : > { %v1991_v60 = vpack.c.bf16 %v222_v58, %v220_v57 }
  0x4e   : > { %1678 = vmatmul.mubr.msk.f32.gmra.mrb[30].mxu0 %vm381_vm0, %v369_v54  ;;  %1950 = vmatprep.subr.bf16.mxu1 %v1949_v59  ;;  %v223_v54 = vld [vmem:[%s3029_s1 + $0x188] sm:$0xff] }
  0x4f   : > { %1952 = vmatpush1.bf16.msra.mxu1 %v1951_v62  ;;  %v1989_v56 = vpack.c.bf16 %v223_v54, %v221_v53  ;;  %v227_v59 = vld [vmem:[%s3029_s1 + $0x1a8] sm:$0xff]  ;;  %v224_v62 = vld [vmem:[%s3029_s1 + $0x190] sm:$0xff] }
  0x50   : > { %v1993_v61 = vpack.c.bf16 %v227_v59, %v225_v7  ;;  %v1995_v0 = vpack.c.bf16 %v226_v63, %v224_v62 }
  0x51   : > { %1990 = vmatprep.subr.bf16.mxu0 %v1989_v56 }
  0x52   : > { %1992 = vmatpush1.bf16.msra.mxu0 %v1991_v60 }
  0x53   : > { %1994 = vmatprep.subr.bf16.mxu0 %v1993_v61 }
  0x56   : > { %1996 = vmatpush1.bf16.msra.mxu0 %v1995_v0 }
  0xe5   : > { %v496_v9 = vpop.f32.mrb[0].mxu0 }
  0xe6   : > { %v497_v10 = vadd.f32 %v496_v9, %v2595_v6  ;;  %v498_v11 = vpop.f32.mrb[1].mxu0 }
  0xe7   : > { %v499_v12 = vadd.f32 %v498_v11, %v2598_v8 }
  0xe8   : > { %v591_v15 = vmax.f32 %v497_v10, 0.0 }
  0xe9   : > { %v502_v13 = vpop.f32.mrb[2].mxu0  ;;  %v592_v14 = vmax.f32 %v499_v12, 0.0 }
  0xea   : > { %v503_v16 = vadd.f32 %v502_v13, %v2595_v6  ;;  %v504_v17 = vpop.f32.mrb[3].mxu0 }
  0xeb   : > { %v505_v18 = vadd.f32 %v504_v17, %v2598_v8  ;;  %698 = vmatprep.mubr.f32.mxu1 %v592_v14 }
  0xec   : > { %699 = vmatmul.mubr.f32.vlgmr.msra.gmra.mrb[0].mxu1 %v591_v15  ;;  %v593_v21 = vmax.f32 %v503_v16, 0.0 }
  0xed   : > { %v594_v19 = vmax.f32 %v505_v18, 0.0  ;;  %v508_v20 = vpop.f32.mrb[4].mxu0 }
  0xee   : > { %v509_v22 = vadd.f32 %v508_v20, %v2595_v6  ;;  %v510_v23 = vpop.f32.mrb[5].mxu0 }
  0xef   : > { %v511_v24 = vadd.f32 %v510_v23, %v2598_v8  ;;  %704 = vmatprep.mubr.f32.mxu1 %v594_v19 }
  0xf0   : > { %705 = vmatmul.mubr.f32.gmra.mrb[2].mxu1 %v593_v21  ;;  %v595_v27 = vmax.f32 %v509_v22, 0.0 }
  0xf1   : > { %v596_v25 = vmax.f32 %v511_v24, 0.0  ;;  %v514_v26 = vpop.f32.mrb[6].mxu0 }
  0xf2   : > { %v515_v28 = vadd.f32 %v514_v26, %v2595_v6  ;;  %v516_v29 = vpop.f32.mrb[7].mxu0 }
  0xf3   : > { %v517_v30 = vadd.f32 %v516_v29, %v2598_v8  ;;  %710 = vmatprep.mubr.f32.mxu1 %v596_v25 }
  0xf4   : > { %711 = vmatmul.mubr.f32.gmra.mrb[4].mxu1 %v595_v27  ;;  %v597_v33 = vmax.f32 %v515_v28, 0.0 }
  0xf5   : > { %v598_v31 = vmax.f32 %v517_v30, 0.0  ;;  %v520_v32 = vpop.f32.mrb[8].mxu0 }
  0xf6   : > { %v521_v34 = vadd.f32 %v520_v32, %v2595_v6  ;;  %v522_v35 = vpop.f32.mrb[9].mxu0 }
  0xf7   : > { %v523_v36 = vadd.f32 %v522_v35, %v2598_v8  ;;  %716 = vmatprep.mubr.f32.mxu1 %v598_v31 }
  0xf8   : > { %717 = vmatmul.mubr.f32.gmra.mrb[6].mxu1 %v597_v33  ;;  %v599_v39 = vmax.f32 %v521_v34, 0.0 }
  0xf9   : > { %v600_v37 = vmax.f32 %v523_v36, 0.0  ;;  %v526_v38 = vpop.f32.mrb[10].mxu0 }
  0xfa   : > { %v527_v40 = vadd.f32 %v526_v38, %v2595_v6  ;;  %v528_v41 = vpop.f32.mrb[11].mxu0 }
  0xfb   : > { %v529_v42 = vadd.f32 %v528_v41, %v2598_v8  ;;  %722 = vmatprep.mubr.f32.mxu1 %v600_v37 }
  0xfc   : > { %723 = vmatmul.mubr.f32.gmra.mrb[8].mxu1 %v599_v39  ;;  %v601_v45 = vmax.f32 %v527_v40, 0.0 }
  0xfd   : > { %v602_v43 = vmax.f32 %v529_v42, 0.0  ;;  %v532_v44 = vpop.f32.mrb[12].mxu0 }
  0xfe   : > { %v533_v46 = vadd.f32 %v532_v44, %v2595_v6  ;;  %v534_v47 = vpop.f32.mrb[13].mxu0 }
  0xff   : > { %v535_v48 = vadd.f32 %v534_v47, %v2598_v8  ;;  %728 = vmatprep.mubr.f32.mxu1 %v602_v43 }
 0x100   : > { %729 = vmatmul.mubr.f32.gmra.mrb[10].mxu1 %v601_v45  ;;  %v603_v51 = vmax.f32 %v533_v46, 0.0  ;;  %v229_v45 = vld [vmem:[%s3029_s1 + $0x1b8] sm:$0xff]  ;;  %v231_v46 = vld [vmem:[%s3029_s1 + $0x1c8] sm:$0xff] }
 0x101   : > { %v604_v49 = vmax.f32 %v535_v48, 0.0  ;;  %v538_v50 = vpop.f32.mrb[14].mxu0  ;;  %v1997_v47 = vpack.c.bf16 %v231_v46, %v229_v45 }
 0x102   : > { %v539_v52 = vadd.f32 %v538_v50, %v2595_v6  ;;  %v540_v53 = vpop.f32.mrb[15].mxu0  ;;  %v323_v50 = vld [vmem:[%s3030_s2 + $0x310] sm:$0xff] }
 0x103   : > { %v541_v54 = vadd.f32 %v540_v53, %v2598_v8  ;;  %734 = vmatprep.mubr.f32.mxu1 %v604_v49  ;;  %1998 = vmatprep.subr.bf16.mxu0 %v1997_v47  ;;  %v322_v49 = vld [vmem:[%s3030_s2 + $0x300] sm:$0xff]  ;;  %v307_v53 = vld [vmem:[%s3030_s2 + $0x210] sm:$0xff] }
 0x104   : > { %735 = vmatmul.mubr.f32.gmra.mrb[12].mxu1 %v603_v51  ;;  %v605_v57 = vmax.f32 %v539_v52, 0.0  ;;  %v306_v51 = vld [vmem:[%s3030_s2 + $0x200] sm:$0xff]  ;;  %v2001_v52 = vpack.c.bf16 %v323_v50, %v322_v49 }
 0x105   : > { %v606_v55 = vmax.f32 %v541_v54, 0.0  ;;  %v544_v56 = vpop.f32.mrb[16].mxu0  ;;  %v324_v54 = vld [vmem:[%s3030_s2 + $0x320] sm:$0xff] }
 0x106   : > { %v545_v58 = vadd.f32 %v544_v56, %v2595_v6  ;;  %v546_v7 = vpop.f32.mrb[17].mxu0  ;;  %v2003_v56 = vpack.c.bf16 %v307_v53, %v306_v51  ;;  %2002 = vmatprep.subr.bf16.mxu1 %v2001_v52 }
 0x107   : > { %v547_v59 = vadd.f32 %v546_v7, %v2598_v8  ;;  %740 = vmatprep.mubr.f32.mxu1 %v606_v55  ;;  %v325_v55 = vld [vmem:[%s3030_s2 + $0x330] sm:$0xff] }
 0x108   : > { %741 = vmatmul.mubr.f32.gmra.mrb[14].mxu1 %v605_v57  ;;  %v607_v62 = vmax.f32 %v545_v58, 0.0  ;;  %v2005_v57 = vpack.c.bf16 %v325_v55, %v324_v54  ;;  %v308_v58 = vld [vmem:[%s3030_s2 + $0x220] sm:$0xff]  ;;  %v309_v7 = vld [vmem:[%s3030_s2 + $0x230] sm:$0xff] }
 0x109   : > { %v608_v60 = vmax.f32 %v547_v59, 0.0  ;;  %v550_v61 = vpop.f32.mrb[18].mxu0  ;;  %v326_v59 = vld [vmem:[%s3030_s2 + $0x340] sm:$0xff]  ;;  %2004 = vmatpush3.bf16.msra.mxu1 %v2003_v56 }
 0x10a   : > { %v551_v63 = vadd.f32 %v550_v61, %v2595_v6  ;;  %v552_v0 = vpop.f32.mrb[19].mxu0  ;;  %v2007_v61 = vpack.c.bf16 %v309_v7, %v308_v58  ;;  %2006 = vmatprep.subr.bf16.mxu1 %v2005_v57 }
 0x10b   : > { %v553_v1 = vadd.f32 %v552_v0, %v2598_v8  ;;  %746 = vmatprep.mubr.f32.mxu1 %v608_v60  ;;  %v327_v60 = vld [vmem:[%s3030_s2 + $0x350] sm:$0xff] }
 0x10c   : > { %747 = vmatmul.mubr.f32.gmra.mrb[16].mxu1 %v607_v62  ;;  %v609_v9 = vmax.f32 %v551_v63, 0.0  ;;  %v2009_v62 = vpack.c.bf16 %v327_v60, %v326_v59  ;;  %v310_v63 = vld [vmem:[%s3030_s2 + $0x240] sm:$0xff]  ;;  %v311_v0 = vld [vmem:[%s3030_s2 + $0x250] sm:$0xff] }
 0x10d   : > { %v610_v2 = vmax.f32 %v553_v1, 0.0  ;;  %v556_v4 = vpop.f32.mrb[20].mxu0  ;;  %v328_v1 = vld [vmem:[%s3030_s2 + $0x360] sm:$0xff]  ;;  %2008 = vmatpush3.bf16.msra.mxu1 %v2007_v61 }
 0x10e   : > { %v557_v10 = vadd.f32 %v556_v4, %v2595_v6  ;;  %v558_v11 = vpop.f32.mrb[21].mxu0  ;;  %v2011_v4 = vpack.c.bf16 %v311_v0, %v310_v63  ;;  %2010 = vmatprep.subr.bf16.mxu1 %v2009_v62 }
 0x10f   : > { %v559_v12 = vadd.f32 %v558_v11, %v2598_v8  ;;  %752 = vmatprep.mubr.f32.mxu1 %v610_v2  ;;  %v329_v2 = vld [vmem:[%s3030_s2 + $0x370] sm:$0xff] }
 0x110   : > { %753 = vmatmul.mubr.f32.gmra.mrb[18].mxu1 %v609_v9  ;;  %v611_v15 = vmax.f32 %v557_v10, 0.0  ;;  %v2013_v9 = vpack.c.bf16 %v329_v2, %v328_v1  ;;  %v312_v10 = vld [vmem:[%s3030_s2 + $0x260] sm:$0xff]  ;;  %v313_v11 = vld [vmem:[%s3030_s2 + $0x270] sm:$0xff] }
 0x111   : > { %v612_v13 = vmax.f32 %v559_v12, 0.0  ;;  %v562_v14 = vpop.f32.mrb[22].mxu0  ;;  %v330_v12 = vld [vmem:[%s3030_s2 + $0x380] sm:$0xff]  ;;  %2012 = vmatpush3.bf16.msra.mxu1 %v2011_v4 }
 0x112   : > { %v563_v16 = vadd.f32 %v562_v14, %v2595_v6  ;;  %v564_v17 = vpop.f32.mrb[23].mxu0  ;;  %v2015_v14 = vpack.c.bf16 %v313_v11, %v312_v10  ;;  %2014 = vmatprep.subr.bf16.mxu1 %v2013_v9 }
 0x113   : > { %v565_v18 = vadd.f32 %v564_v17, %v2598_v8  ;;  %758 = vmatprep.mubr.f32.mxu1 %v612_v13  ;;  %v331_v13 = vld [vmem:[%s3030_s2 + $0x390] sm:$0xff] }
 0x114   : > { %759 = vmatmul.mubr.f32.gmra.mrb[20].mxu1 %v611_v15  ;;  %v613_v21 = vmax.f32 %v563_v16, 0.0  ;;  %v2017_v15 = vpack.c.bf16 %v331_v13, %v330_v12  ;;  %v314_v16 = vld [vmem:[%s3030_s2 + $0x280] sm:$0xff]  ;;  %v315_v17 = vld [vmem:[%s3030_s2 + $0x290] sm:$0xff] }
 0x115   : > { %v614_v19 = vmax.f32 %v565_v18, 0.0  ;;  %v568_v20 = vpop.f32.mrb[24].mxu0  ;;  %v332_v18 = vld [vmem:[%s3030_s2 + $0x3a0] sm:$0xff]  ;;  %2016 = vmatpush3.bf16.msra.mxu1 %v2015_v14 }
 0x116   : > { %v569_v22 = vadd.f32 %v568_v20, %v2595_v6  ;;  %v570_v23 = vpop.f32.mrb[25].mxu0  ;;  %v2019_v20 = vpack.c.bf16 %v315_v17, %v314_v16  ;;  %2018 = vmatprep.subr.bf16.mxu1 %v2017_v15 }
 0x117   : > { %v571_v24 = vadd.f32 %v570_v23, %v2598_v8  ;;  %764 = vmatprep.mubr.f32.mxu1 %v614_v19  ;;  %v333_v19 = vld [vmem:[%s3030_s2 + $0x3b0] sm:$0xff] }
 0x118   : > { %765 = vmatmul.mubr.f32.gmra.mrb[22].mxu1 %v613_v21  ;;  %v615_v27 = vmax.f32 %v569_v22, 0.0  ;;  %v2021_v21 = vpack.c.bf16 %v333_v19, %v332_v18  ;;  %v316_v22 = vld [vmem:[%s3030_s2 + $0x2a0] sm:$0xff]  ;;  %v317_v23 = vld [vmem:[%s3030_s2 + $0x2b0] sm:$0xff] }
 0x119   : > { %v616_v25 = vmax.f32 %v571_v24, 0.0  ;;  %v574_v26 = vpop.f32.mrb[26].mxu0  ;;  %v334_v24 = vld [vmem:[%s3030_s2 + $0x3c0] sm:$0xff]  ;;  %2020 = vmatpush3.bf16.msra.mxu1 %v2019_v20 }
 0x11a   : > { %v575_v28 = vadd.f32 %v574_v26, %v2595_v6  ;;  %v576_v29 = vpop.f32.mrb[27].mxu0  ;;  %v2023_v26 = vpack.c.bf16 %v317_v23, %v316_v22  ;;  %2022 = vmatprep.subr.bf16.mxu1 %v2021_v21 }
 0x11b   : > { %v577_v30 = vadd.f32 %v576_v29, %v2598_v8  ;;  %770 = vmatprep.mubr.f32.mxu1 %v616_v25  ;;  %v335_v25 = vld [vmem:[%s3030_s2 + $0x3d0] sm:$0xff] }
 0x11c   : > { %771 = vmatmul.mubr.f32.gmra.mrb[24].mxu1 %v615_v27  ;;  %v617_v33 = vmax.f32 %v575_v28, 0.0  ;;  %v2025_v27 = vpack.c.bf16 %v335_v25, %v334_v24  ;;  %v318_v28 = vld [vmem:[%s3030_s2 + $0x2c0] sm:$0xff]  ;;  %v319_v29 = vld [vmem:[%s3030_s2 + $0x2d0] sm:$0xff] }
 0x11d   : > { %v618_v31 = vmax.f32 %v577_v30, 0.0  ;;  %v580_v32 = vpop.f32.mrb[28].mxu0  ;;  %v336_v30 = vld [vmem:[%s3030_s2 + $0x3e0] sm:$0xff]  ;;  %2024 = vmatpush3.bf16.msra.mxu1 %v2023_v26 }
 0x11e   : > { %v581_v34 = vadd.f32 %v580_v32, %v2595_v6  ;;  %v582_v35 = vpop.f32.mrb[29].mxu0  ;;  %v2027_v32 = vpack.c.bf16 %v319_v29, %v318_v28  ;;  %2026 = vmatprep.subr.bf16.mxu1 %v2025_v27 }
 0x11f   : > { %v583_v36 = vadd.f32 %v582_v35, %v2598_v8  ;;  %776 = vmatprep.mubr.f32.mxu1 %v618_v31  ;;  %v337_v31 = vld [vmem:[%s3030_s2 + $0x3f0] sm:$0xff] }
 0x120   : > { %777 = vmatmul.mubr.f32.gmra.mrb[26].mxu1 %v617_v33  ;;  %v619_v39 = vmax.f32 %v581_v34, 0.0  ;;  %v2029_v33 = vpack.c.bf16 %v337_v31, %v336_v30  ;;  %v320_v34 = vld [vmem:[%s3030_s2 + $0x2e0] sm:$0xff]  ;;  %v321_v35 = vld [vmem:[%s3030_s2 + $0x2f0] sm:$0xff] }
 0x121   : > { %v620_v37 = vmax.f32 %v583_v36, 0.0  ;;  %v586_v38 = vpop.f32.mrb[30].mxu0  ;;  %2028 = vmatpush3.bf16.msra.mxu1 %v2027_v32  ;;  %v2031_v36 = vpack.c.bf16 %v321_v35, %v320_v34 }
 0x122   : > { %v587_v40 = vadd.f32 %v586_v38, %v2595_v6  ;;  %v588_v41 = vpop.f32.mrb[31].mxu0  ;;  %v228_v6 = vld [vmem:[%s3029_s1 + $0x1b0] sm:$0xff]  ;;  %2030 = vmatprep.subr.bf16.mxu1 %v2029_v33 }
 0x123   : > { %v589_v42 = vadd.f32 %v588_v41, %v2598_v8  ;;  %782 = vmatprep.mubr.f32.mxu1 %v620_v37  ;;  %v230_v8 = vld [vmem:[%s3029_s1 + $0x1c0] sm:$0xff]  ;;  %v1661_v37 = vld [vmem:[%s3029_s1 + $0x1d1] ss:$8 sm:$0x3] }
 0x124   : > { %783 = vmatmul.mubr.f32.gmra.mrb[28].mxu1 %v619_v39  ;;  %v621_v44 = vmax.f32 %v587_v40, 0.0  ;;  %v1999_v48 = vpack.c.bf16 %v230_v8, %v228_v6  ;;  %v2744_v38 = vrot.slane %v1661_v37, %v2587_v3  ;;  %v2747_v39 = vrot.slane %v1661_v37, %v2592_v5 }
 0x125   : > { %v622_v43 = vmax.f32 %v589_v42, 0.0  ;;  %2032 = vmatpush3.bf16.msra.mxu1 %v2031_v36 }
 0x126   : > { %2000 = vmatpush1.bf16.msra.mxu0 %v1999_v48 }
 0x127   : > { %788 = vmatprep.mubr.f32.mxu1 %v622_v43 }
 0x128   : > { %789 = vmatmul.mubr.f32.gmra.mrb[30].mxu1 %v621_v44 }
 0x1bf   : > { %v700_v40 = vpop.f32.mrb[0].mxu1 }
 0x1c0   : > { %v701_v41 = vadd.f32 %v700_v40, %v2744_v38  ;;  %v702_v42 = vpop.f32.mrb[1].mxu1 }
 0x1c1   : > { %v703_v43 = vadd.f32 %v702_v42, %v2747_v39 }
 0x1c2   : > { %v795_v46 = vmax.f32 %v701_v41, 0.0 }
 0x1c3   : > { %v796_v44 = vmax.f32 %v703_v43, 0.0  ;;  %v706_v45 = vpop.f32.mrb[2].mxu1 }
 0x1c4   : > { %v707_v47 = vadd.f32 %v706_v45, %v2744_v38  ;;  %v708_v6 = vpop.f32.mrb[3].mxu1 }
 0x1c5   : > { %v709_v8 = vadd.f32 %v708_v6, %v2747_v39  ;;  %1679 = vmatprep.mubr.msk.f32.mxu0 %vm838_vm1, %v796_v44 }
 0x1c6   : > { %952 = vmatmul.mubr.f32.vlgmr.msra.gmra.mrb[32].mxu0 %v795_v46  ;;  %v797_v50 = vmax.f32 %v707_v47, 0.0 }
 0x1c7   : > { %v798_v48 = vmax.f32 %v709_v8, 0.0  ;;  %v712_v49 = vpop.f32.mrb[4].mxu1 }
 0x1c8   : > { %v713_v51 = vadd.f32 %v712_v49, %v2744_v38  ;;  %v714_v52 = vpop.f32.mrb[5].mxu1 }
 0x1c9   : > { %v715_v53 = vadd.f32 %v714_v52, %v2747_v39  ;;  %1680 = vmatprep.mubr.msk.f32.mxu0 %vm838_vm1, %v798_v48 }
 0x1ca   : > { %958 = vmatmul.mubr.f32.gmra.mrb[34].mxu0 %v797_v50  ;;  %v799_v56 = vmax.f32 %v713_v51, 0.0 }
 0x1cb   : > { %v800_v54 = vmax.f32 %v715_v53, 0.0  ;;  %v718_v55 = vpop.f32.mrb[6].mxu1 }
 0x1cc   : > { %v719_v57 = vadd.f32 %v718_v55, %v2744_v38  ;;  %v720_v58 = vpop.f32.mrb[7].mxu1 }
 0x1cd   : > { %v721_v7 = vadd.f32 %v720_v58, %v2747_v39  ;;  %1681 = vmatprep.mubr.msk.f32.mxu0 %vm838_vm1, %v800_v54 }
 0x1ce   : > { %964 = vmatmul.mubr.f32.gmra.mrb[36].mxu0 %v799_v56  ;;  %v801_v61 = vmax.f32 %v719_v57, 0.0 }
 0x1cf   : > { %v802_v59 = vmax.f32 %v721_v7, 0.0  ;;  %v724_v60 = vpop.f32.mrb[8].mxu1 }
 0x1d0   : > { %v725_v62 = vadd.f32 %v724_v60, %v2744_v38  ;;  %v726_v63 = vpop.f32.mrb[9].mxu1 }
 0x1d1   : > { %v727_v0 = vadd.f32 %v726_v63, %v2747_v39  ;;  %1682 = vmatprep.mubr.msk.f32.mxu0 %vm838_vm1, %v802_v59 }
 0x1d2   : > { %970 = vmatmul.mubr.f32.gmra.mrb[38].mxu0 %v801_v61  ;;  %v803_v4 = vmax.f32 %v725_v62, 0.0 }
 0x1d3   : > { %v804_v1 = vmax.f32 %v727_v0, 0.0  ;;  %v730_v2 = vpop.f32.mrb[10].mxu1 }
 0x1d4   : > { %v731_v9 = vadd.f32 %v730_v2, %v2744_v38  ;;  %v732_v10 = vpop.f32.mrb[11].mxu1 }
 0x1d5   : > { %v733_v11 = vadd.f32 %v732_v10, %v2747_v39  ;;  %1683 = vmatprep.mubr.msk.f32.mxu0 %vm838_vm1, %v804_v1 }
 0x1d6   : > { %976 = vmatmul.mubr.f32.gmra.mrb[40].mxu0 %v803_v4  ;;  %v805_v14 = vmax.f32 %v731_v9, 0.0 }
 0x1d7   : > { %v806_v12 = vmax.f32 %v733_v11, 0.0  ;;  %v736_v13 = vpop.f32.mrb[12].mxu1 }
 0x1d8   : > { %v737_v15 = vadd.f32 %v736_v13, %v2744_v38  ;;  %v738_v16 = vpop.f32.mrb[13].mxu1 }
 0x1d9   : > { %v739_v17 = vadd.f32 %v738_v16, %v2747_v39  ;;  %1684 = vmatprep.mubr.msk.f32.mxu0 %vm838_vm1, %v806_v12  ;;  %v341_v16 = vld [vmem:[%s3030_s2 + $0x238] sm:$0xff] }
 0x1da   : > { %982 = vmatmul.mubr.f32.gmra.mrb[42].mxu0 %v805_v14  ;;  %v807_v20 = vmax.f32 %v737_v15, 0.0  ;;  %v338_v14 = vld [vmem:[%s3030_s2 + $0x208] sm:$0xff]  ;;  %v339_v15 = vld [vmem:[%s3030_s2 + $0x218] sm:$0xff] }
 0x1db   : > { %v808_v18 = vmax.f32 %v739_v17, 0.0  ;;  %v742_v19 = vpop.f32.mrb[14].mxu1 }
 0x1dc   : > { %v743_v21 = vadd.f32 %v742_v19, %v2744_v38  ;;  %v744_v22 = vpop.f32.mrb[15].mxu1  ;;  %v343_v19 = vld [vmem:[%s3030_s2 + $0x258] sm:$0xff] }
 0x1dd   : > { %v745_v23 = vadd.f32 %v744_v22, %v2747_v39  ;;  %1685 = vmatprep.mubr.msk.f32.mxu0 %vm838_vm1, %v808_v18  ;;  %v342_v18 = vld [vmem:[%s3030_s2 + $0x248] sm:$0xff]  ;;  %v345_v22 = vld [vmem:[%s3030_s2 + $0x278] sm:$0xff] }
 0x1de   : > { %988 = vmatmul.mubr.f32.gmra.mrb[44].mxu0 %v807_v20  ;;  %v809_v26 = vmax.f32 %v743_v21, 0.0  ;;  %v2041_v20 = vpack.c.bf16 %v343_v19, %v342_v18  ;;  %v344_v21 = vld [vmem:[%s3030_s2 + $0x268] sm:$0xff] }
 0x1df   : > { %v810_v24 = vmax.f32 %v745_v23, 0.0  ;;  %v748_v25 = vpop.f32.mrb[16].mxu1  ;;  %v2045_v23 = vpack.c.bf16 %v345_v22, %v344_v21 }
 0x1e0   : > { %v749_v27 = vadd.f32 %v748_v25, %v2744_v38  ;;  %v750_v28 = vpop.f32.mrb[17].mxu1  ;;  %v347_v25 = vld [vmem:[%s3030_s2 + $0x298] sm:$0xff] }
 0x1e1   : > { %v751_v29 = vadd.f32 %v750_v28, %v2747_v39  ;;  %1686 = vmatprep.mubr.msk.f32.mxu0 %vm838_vm1, %v810_v24  ;;  %v346_v24 = vld [vmem:[%s3030_s2 + $0x288] sm:$0xff] }
 0x1e2   : > { %994 = vmatmul.mubr.f32.gmra.mrb[46].mxu0 %v809_v26  ;;  %v811_v32 = vmax.f32 %v749_v27, 0.0  ;;  %v2049_v26 = vpack.c.bf16 %v347_v25, %v346_v24  ;;  %v1662_v27 = vld [vmem:[%s3029_s1 + $0x1d2] ss:$8 sm:$0x3] }
 0x1e3   : > { %v812_v30 = vmax.f32 %v751_v29, 0.0  ;;  %v754_v31 = vpop.f32.mrb[18].mxu1  ;;  %v2831_v28 = vrot.slane %v1662_v27, %v2587_v3  ;;  %v2834_v29 = vrot.slane %v1662_v27, %v2592_v5 }
 0x1e4   : > { %v755_v33 = vadd.f32 %v754_v31, %v2744_v38  ;;  %v756_v34 = vpop.f32.mrb[19].mxu1 }
 0x1e5   : > { %v757_v35 = vadd.f32 %v756_v34, %v2747_v39  ;;  %1687 = vmatprep.mubr.msk.f32.mxu0 %vm838_vm1, %v812_v30 }
 0x1e6   : > { %1000 = vmatmul.mubr.f32.gmra.mrb[48].mxu0 %v811_v32  ;;  %v813_v40 = vmax.f32 %v755_v33, 0.0 }
 0x1e7   : > { %v814_v36 = vmax.f32 %v757_v35, 0.0  ;;  %v760_v37 = vpop.f32.mrb[20].mxu1 }
 0x1e8   : > { %v761_v41 = vadd.f32 %v760_v37, %v2744_v38  ;;  %v762_v42 = vpop.f32.mrb[21].mxu1 }
 0x1e9   : > { %v763_v43 = vadd.f32 %v762_v42, %v2747_v39  ;;  %1688 = vmatprep.mubr.msk.f32.mxu0 %vm838_vm1, %v814_v36 }
 0x1ea   : > { %1006 = vmatmul.mubr.f32.gmra.mrb[50].mxu0 %v813_v40  ;;  %v815_v46 = vmax.f32 %v761_v41, 0.0 }
 0x1eb   : > { %v816_v44 = vmax.f32 %v763_v43, 0.0  ;;  %v766_v45 = vpop.f32.mrb[22].mxu1 }
 0x1ec   : > { %v767_v47 = vadd.f32 %v766_v45, %v2744_v38  ;;  %v768_v6 = vpop.f32.mrb[23].mxu1 }
 0x1ed   : > { %v769_v8 = vadd.f32 %v768_v6, %v2747_v39  ;;  %1689 = vmatprep.mubr.msk.f32.mxu0 %vm838_vm1, %v816_v44 }
 0x1ee   : > { %1012 = vmatmul.mubr.f32.gmra.mrb[52].mxu0 %v815_v46  ;;  %v817_v50 = vmax.f32 %v767_v47, 0.0 }
 0x1ef   : > { %v818_v48 = vmax.f32 %v769_v8, 0.0  ;;  %v772_v49 = vpop.f32.mrb[24].mxu1 }
 0x1f0   : > { %v773_v51 = vadd.f32 %v772_v49, %v2744_v38  ;;  %v774_v52 = vpop.f32.mrb[25].mxu1 }
 0x1f1   : > { %v775_v53 = vadd.f32 %v774_v52, %v2747_v39  ;;  %1690 = vmatprep.mubr.msk.f32.mxu0 %vm838_vm1, %v818_v48 }
 0x1f2   : > { %1018 = vmatmul.mubr.f32.gmra.mrb[54].mxu0 %v817_v50  ;;  %v819_v56 = vmax.f32 %v773_v51, 0.0 }
 0x1f3   : > { %v820_v54 = vmax.f32 %v775_v53, 0.0  ;;  %v778_v55 = vpop.f32.mrb[26].mxu1 }
 0x1f4   : > { %v779_v57 = vadd.f32 %v778_v55, %v2744_v38  ;;  %v780_v58 = vpop.f32.mrb[27].mxu1 }
 0x1f5   : > { %v781_v7 = vadd.f32 %v780_v58, %v2747_v39  ;;  %1691 = vmatprep.mubr.msk.f32.mxu0 %vm838_vm1, %v820_v54 }
 0x1f6   : > { %1024 = vmatmul.mubr.f32.gmra.mrb[56].mxu0 %v819_v56  ;;  %v821_v61 = vmax.f32 %v779_v57, 0.0 }
 0x1f7   : > { %v822_v59 = vmax.f32 %v781_v7, 0.0  ;;  %v784_v60 = vpop.f32.mrb[28].mxu1 }
 0x1f8   : > { %v785_v62 = vadd.f32 %v784_v60, %v2744_v38  ;;  %v786_v63 = vpop.f32.mrb[29].mxu1 }
 0x1f9   : > { %v787_v0 = vadd.f32 %v786_v63, %v2747_v39  ;;  %1692 = vmatprep.mubr.msk.f32.mxu0 %vm838_vm1, %v822_v59 }
 0x1fa   : > { %1030 = vmatmul.mubr.f32.gmra.mrb[58].mxu0 %v821_v61  ;;  %v823_v4 = vmax.f32 %v785_v62, 0.0 }
 0x1fb   : > { %v824_v1 = vmax.f32 %v787_v0, 0.0  ;;  %v790_v2 = vpop.f32.mrb[30].mxu1 }
 0x1fc   : > { %v791_v9 = vadd.f32 %v790_v2, %v2744_v38  ;;  %v792_v10 = vpop.f32.mrb[31].mxu1  ;;  %v340_v38 = vld [vmem:[%s3030_s2 + $0x228] sm:$0xff] }
 0x1fd   : > { %v793_v11 = vadd.f32 %v792_v10, %v2747_v39  ;;  %1693 = vmatprep.mubr.msk.f32.mxu0 %vm838_vm1, %v824_v1  ;;  %v2033_v39 = vpack.c.bf16 %v339_v15, %v338_v14  ;;  %v2037_v17 = vpack.c.bf16 %v341_v16, %v340_v38 }
 0x1fe   : > { %1036 = vmatmul.mubr.f32.gmra.mrb[60].mxu0 %v823_v4  ;;  %v825_v13 = vmax.f32 %v791_v9, 0.0 }
 0x1ff   : > { %v826_v12 = vmax.f32 %v793_v11, 0.0  ;;  %2034 = vmatprep.subr.bf16.mxu0 %v2033_v39 }
 0x200   : > { %2036 = vmatpush3.bf16.msra.mxu0 %v2033_v39 }
 0x201   : > { %1694 = vmatprep.mubr.msk.f32.mxu0 %vm838_vm1, %v826_v12  ;;  %2038 = vmatprep.subr.bf16.mxu0 %v2037_v17 }
 0x202   : > { %1042 = vmatmul.mubr.f32.gmra.mrb[62].mxu0 %v825_v13 }
 0x204   : > { %2040 = vmatpush3.bf16.msra.mxu0 %v2037_v17 }
 0x205   : > { %2042 = vmatprep.subr.bf16.mxu0 %v2041_v20 }
 0x208   : > { %2044 = vmatpush3.bf16.msra.mxu0 %v2041_v20 }
 0x209   : > { %2046 = vmatprep.subr.bf16.mxu0 %v2045_v23 }
 0x20c   : > { %2048 = vmatpush3.bf16.msra.mxu0 %v2045_v23 }
 0x20d   : > { %2050 = vmatprep.subr.bf16.mxu0 %v2049_v26 }
 0x210   : > { %2052 = vmatpush3.bf16.msra.mxu0 %v2049_v26 }
 0x299   : > { %v953_v30 = vpop.f32.mrb[32].mxu0 }
 0x29a   : > { %v954_v31 = vadd.f32 %v953_v30, %v2831_v28  ;;  %v955_v32 = vpop.f32.mrb[33].mxu0 }
 0x29b   : > { %v956_v33 = vadd.f32 %v955_v32, %v2834_v29 }
 0x29c   : > { %v1048_v36 = vmax.f32 %v954_v31, 0.0 }
 0x29d   : > { %v1049_v34 = vmax.f32 %v956_v33, 0.0  ;;  %v959_v35 = vpop.f32.mrb[34].mxu0 }
 0x29e   : > { %v960_v37 = vadd.f32 %v959_v35, %v2831_v28  ;;  %v961_v40 = vpop.f32.mrb[35].mxu0 }
 0x29f   : > { %v962_v41 = vadd.f32 %v961_v40, %v2834_v29  ;;  %1144 = vmatprep.mubr.f32.mxu1 %v1049_v34 }
 0x2a0   : > { %1145 = vmatmul.mubr.f32.vlgmr.msra.gmra.mrb[32].mxu1 %v1048_v36  ;;  %v1050_v5 = vmax.f32 %v960_v37, 0.0 }
 0x2a1   : > { %v1051_v3 = vmax.f32 %v962_v41, 0.0  ;;  %v965_v42 = vpop.f32.mrb[36].mxu0 }
 0x2a2   : > { %v966_v43 = vadd.f32 %v965_v42, %v2831_v28  ;;  %v967_v44 = vpop.f32.mrb[37].mxu0 }
 0x2a3   : > { %v968_v45 = vadd.f32 %v967_v44, %v2834_v29  ;;  %1149 = vmatprep.mubr.f32.mxu1 %v1051_v3 }
 0x2a4   : > { %1150 = vmatmul.mubr.f32.gmra.mrb[34].mxu1 %v1050_v5  ;;  %v1052_v6 = vmax.f32 %v966_v43, 0.0 }
 0x2a5   : > { %v1053_v46 = vmax.f32 %v968_v45, 0.0  ;;  %v971_v47 = vpop.f32.mrb[38].mxu0 }
 0x2a6   : > { %v972_v8 = vadd.f32 %v971_v47, %v2831_v28  ;;  %v973_v48 = vpop.f32.mrb[39].mxu0 }
 0x2a7   : > { %v974_v49 = vadd.f32 %v973_v48, %v2834_v29  ;;  %1154 = vmatprep.mubr.f32.mxu1 %v1053_v46 }
 0x2a8   : > { %1155 = vmatmul.mubr.f32.gmra.mrb[36].mxu1 %v1052_v6  ;;  %v1054_v52 = vmax.f32 %v972_v8, 0.0 }
 0x2a9   : > { %v1055_v50 = vmax.f32 %v974_v49, 0.0  ;;  %v977_v51 = vpop.f32.mrb[40].mxu0 }
 0x2aa   : > { %v978_v53 = vadd.f32 %v977_v51, %v2831_v28  ;;  %v979_v54 = vpop.f32.mrb[41].mxu0 }
 0x2ab   : > { %v980_v55 = vadd.f32 %v979_v54, %v2834_v29  ;;  %1159 = vmatprep.mubr.f32.mxu1 %v1055_v50 }
 0x2ac   : > { %1160 = vmatmul.mubr.f32.gmra.mrb[38].mxu1 %v1054_v52  ;;  %v1056_v58 = vmax.f32 %v978_v53, 0.0 }
 0x2ad   : > { %v1057_v56 = vmax.f32 %v980_v55, 0.0  ;;  %v983_v57 = vpop.f32.mrb[42].mxu0 }
 0x2ae   : > { %v984_v7 = vadd.f32 %v983_v57, %v2831_v28  ;;  %v985_v59 = vpop.f32.mrb[43].mxu0 }
 0x2af   : > { %v986_v60 = vadd.f32 %v985_v59, %v2834_v29  ;;  %1164 = vmatprep.mubr.f32.mxu1 %v1057_v56 }
 0x2b0   : > { %1165 = vmatmul.mubr.f32.gmra.mrb[40].mxu1 %v1056_v58  ;;  %v1058_v63 = vmax.f32 %v984_v7, 0.0 }
 0x2b1   : > { %v1059_v61 = vmax.f32 %v986_v60, 0.0  ;;  %v989_v62 = vpop.f32.mrb[44].mxu0 }
 0x2b2   : > { %v990_v0 = vadd.f32 %v989_v62, %v2831_v28  ;;  %v991_v1 = vpop.f32.mrb[45].mxu0  ;;  %v349_v62 = vld [vmem:[%s3030_s2 + $0x2b8] sm:$0xff] }
 0x2b3   : > { %v992_v2 = vadd.f32 %v991_v1, %v2834_v29  ;;  %1169 = vmatprep.mubr.f32.mxu1 %v1059_v61  ;;  %v348_v61 = vld [vmem:[%s3030_s2 + $0x2a8] sm:$0xff] }
 0x2b4   : > { %1170 = vmatmul.mubr.f32.gmra.mrb[42].mxu1 %v1058_v63  ;;  %v1060_v10 = vmax.f32 %v990_v0, 0.0  ;;  %v2053_v63 = vpack.c.bf16 %v349_v62, %v348_v61  ;;  %v352_v1 = vld [vmem:[%s3030_s2 + $0x2e8] sm:$0xff] }
 0x2b5   : > { %v1061_v4 = vmax.f32 %v992_v2, 0.0  ;;  %v995_v9 = vpop.f32.mrb[46].mxu0  ;;  %v353_v2 = vld [vmem:[%s3030_s2 + $0x2f8] sm:$0xff] }
 0x2b6   : > { %v996_v11 = vadd.f32 %v995_v9, %v2831_v28  ;;  %v997_v12 = vpop.f32.mrb[47].mxu0  ;;  %2054 = vmatprep.subr.bf16.mxu0 %v2053_v63 }
 0x2b7   : > { %v998_v13 = vadd.f32 %v997_v12, %v2834_v29  ;;  %1174 = vmatprep.mubr.f32.mxu1 %v1061_v4  ;;  %2056 = vmatpush3.bf16.msra.mxu0 %v2053_v63  ;;  %v2061_v4 = vpack.c.bf16 %v353_v2, %v352_v1 }
 0x2b8   : > { %1175 = vmatmul.mubr.f32.gmra.mrb[44].mxu1 %v1060_v10  ;;  %v1062_v38 = vmax.f32 %v996_v11, 0.0  ;;  %v2889_v10 = vld [vmem:[%s3029_s1 + $0x1d3] ss:$0 sm:$0xff] }
 0x2b9   : > { %v1063_v14 = vmax.f32 %v998_v13, 0.0  ;;  %v1001_v15 = vpop.f32.mrb[48].mxu0 }
 0x2ba   : > { %v1002_v39 = vadd.f32 %v1001_v15, %v2831_v28  ;;  %v1003_v16 = vpop.f32.mrb[49].mxu0 }
 0x2bb   : > { %v1004_v17 = vadd.f32 %v1003_v16, %v2834_v29  ;;  %1179 = vmatprep.mubr.f32.mxu1 %v1063_v14 }
 0x2bc   : > { %1180 = vmatmul.mubr.f32.gmra.mrb[46].mxu1 %v1062_v38  ;;  %v1064_v20 = vmax.f32 %v1002_v39, 0.0 }
 0x2bd   : > { %v1065_v18 = vmax.f32 %v1004_v17, 0.0  ;;  %v1007_v19 = vpop.f32.mrb[50].mxu0 }
 0x2be   : > { %v1008_v21 = vadd.f32 %v1007_v19, %v2831_v28  ;;  %v1009_v22 = vpop.f32.mrb[51].mxu0 }
 0x2bf   : > { %v1010_v23 = vadd.f32 %v1009_v22, %v2834_v29  ;;  %1184 = vmatprep.mubr.f32.mxu1 %v1065_v18 }
 0x2c0   : > { %1185 = vmatmul.mubr.f32.gmra.mrb[48].mxu1 %v1064_v20  ;;  %v1066_v26 = vmax.f32 %v1008_v21, 0.0 }
 0x2c1   : > { %v1067_v24 = vmax.f32 %v1010_v23, 0.0  ;;  %v1013_v25 = vpop.f32.mrb[52].mxu0 }
 0x2c2   : > { %v1014_v27 = vadd.f32 %v1013_v25, %v2831_v28  ;;  %v1015_v30 = vpop.f32.mrb[53].mxu0 }
 0x2c3   : > { %v1016_v31 = vadd.f32 %v1015_v30, %v2834_v29  ;;  %1189 = vmatprep.mubr.f32.mxu1 %v1067_v24 }
 0x2c4   : > { %1190 = vmatmul.mubr.f32.gmra.mrb[50].mxu1 %v1066_v26  ;;  %v1068_v34 = vmax.f32 %v1014_v27, 0.0 }
 0x2c5   : > { %v1069_v32 = vmax.f32 %v1016_v31, 0.0  ;;  %v1019_v33 = vpop.f32.mrb[54].mxu0 }
 0x2c6   : > { %v1020_v35 = vadd.f32 %v1019_v33, %v2831_v28  ;;  %v1021_v36 = vpop.f32.mrb[55].mxu0 }
 0x2c7   : > { %v1022_v37 = vadd.f32 %v1021_v36, %v2834_v29  ;;  %1194 = vmatprep.mubr.f32.mxu1 %v1069_v32 }
 0x2c8   : > { %1195 = vmatmul.mubr.f32.gmra.mrb[52].mxu1 %v1068_v34  ;;  %v1070_v3 = vmax.f32 %v1020_v35, 0.0 }
 0x2c9   : > { %v1071_v40 = vmax.f32 %v1022_v37, 0.0  ;;  %v1025_v41 = vpop.f32.mrb[56].mxu0 }
 0x2ca   : > { %v1026_v42 = vadd.f32 %v1025_v41, %v2831_v28  ;;  %v1027_v5 = vpop.f32.mrb[57].mxu0 }
 0x2cb   : > { %v1028_v43 = vadd.f32 %v1027_v5, %v2834_v29  ;;  %1199 = vmatprep.mubr.f32.mxu1 %v1071_v40 }
 0x2cc   : > { %1200 = vmatmul.mubr.f32.gmra.mrb[54].mxu1 %v1070_v3  ;;  %v1072_v46 = vmax.f32 %v1026_v42, 0.0 }
 0x2cd   : > { %v1073_v44 = vmax.f32 %v1028_v43, 0.0  ;;  %v1031_v45 = vpop.f32.mrb[58].mxu0 }
 0x2ce   : > { %v1032_v47 = vadd.f32 %v1031_v45, %v2831_v28  ;;  %v1033_v6 = vpop.f32.mrb[59].mxu0 }
 0x2cf   : > { %v1034_v8 = vadd.f32 %v1033_v6, %v2834_v29  ;;  %1204 = vmatprep.mubr.f32.mxu1 %v1073_v44 }
 0x2d0   : > { %1205 = vmatmul.mubr.f32.gmra.mrb[56].mxu1 %v1072_v46  ;;  %v1074_v50 = vmax.f32 %v1032_v47, 0.0 }
 0x2d1   : > { %v1075_v48 = vmax.f32 %v1034_v8, 0.0  ;;  %v1037_v49 = vpop.f32.mrb[60].mxu0 }
 0x2d2   : > { %v1038_v51 = vadd.f32 %v1037_v49, %v2831_v28  ;;  %v1039_v52 = vpop.f32.mrb[61].mxu0 }
 0x2d3   : > { %v1040_v53 = vadd.f32 %v1039_v52, %v2834_v29  ;;  %1209 = vmatprep.mubr.f32.mxu1 %v1075_v48 }
 0x2d4   : > { %1210 = vmatmul.mubr.f32.gmra.mrb[58].mxu1 %v1074_v50  ;;  %v1076_v56 = vmax.f32 %v1038_v51, 0.0 }
 0x2d5   : > { %v1077_v54 = vmax.f32 %v1040_v53, 0.0  ;;  %v1043_v55 = vpop.f32.mrb[62].mxu0 }
 0x2d6   : > { %v1044_v57 = vadd.f32 %v1043_v55, %v2831_v28  ;;  %v1045_v58 = vpop.f32.mrb[63].mxu0  ;;  %v350_v28 = vld [vmem:[%s3030_s2 + $0x2c8] sm:$0xff] }
 0x2d7   : > { %v1046_v7 = vadd.f32 %v1045_v58, %v2834_v29  ;;  %1214 = vmatprep.mubr.f32.mxu1 %v1077_v54  ;;  %v351_v29 = vld [vmem:[%s3030_s2 + $0x2d8] sm:$0xff] }
 0x2d8   : > { %1215 = vmatmul.mubr.f32.gmra.mrb[60].mxu1 %v1076_v56  ;;  %v1078_v60 = vmax.f32 %v1044_v57, 0.0  ;;  %v2057_v0 = vpack.c.bf16 %v351_v29, %v350_v28 }
 0x2d9   : > { %v1079_v59 = vmax.f32 %v1046_v7, 0.0 }
 0x2da   : > { %2058 = vmatprep.subr.bf16.mxu0 %v2057_v0 }
 0x2db   : > { %1219 = vmatprep.mubr.f32.mxu1 %v1079_v59  ;;  %2060 = vmatpush3.bf16.msra.mxu0 %v2057_v0 }
 0x2dc   : > { %1220 = vmatmul.mubr.f32.gmra.mrb[62].mxu1 %v1078_v60  ;;  %2062 = vmatprep.subr.bf16.mxu0 %v2061_v4 }
 0x2df   : > { %2064 = vmatpush3.bf16.msra.mxu0 %v2061_v4 }
 0x373   : > { %v1745_v9 = vpop.f32.mrb[32].mxu1 }
 0x374   : > { %v1746_v11 = vpop.f32.mrb[33].mxu1 }
 0x375   : > { %v1747_v12 = vadd.f32 %v1746_v11, %v1745_v9 }
 0x377   : > { %v1147_v13 = vadd.f32 %v1747_v12, %v2889_v10  ;;  %v1748_v14 = vpop.f32.mrb[34].mxu1 }
 0x378   : > { %v1749_v15 = vpop.f32.mrb[35].mxu1 }
 0x379   : > { %v1225_v38 = vmax.f32 %v1147_v13, 0.0  ;;  %v1750_v39 = vadd.f32 %v1749_v15, %v1748_v14 }
 0x37b   : > { %v1152_v16 = vadd.f32 %v1750_v39, %v2889_v10  ;;  %v1751_v17 = vpop.f32.mrb[36].mxu1  ;;  %1857 = vmatprep.mubr.f32.mxu0 %v1225_v38 }
 0x37c   : > { %v1752_v18 = vpop.f32.mrb[37].mxu1 }
 0x37d   : > { %v1226_v19 = vmax.f32 %v1152_v16, 0.0  ;;  %v1753_v20 = vadd.f32 %v1752_v18, %v1751_v17 }
 0x37f   : > { %v1157_v21 = vadd.f32 %v1753_v20, %v2889_v10  ;;  %v1754_v22 = vpop.f32.mrb[38].mxu1  ;;  %1858 = vmatmul.mubr.f32.vlgmr.msra.gmra.mrb[64].mxu0 %v1226_v19 }
 0x380   : > { %v1755_v23 = vpop.f32.mrb[39].mxu1 }
 0x381   : > { %v1227_v24 = vmax.f32 %v1157_v21, 0.0  ;;  %v1756_v25 = vadd.f32 %v1755_v23, %v1754_v22 }
 0x383   : > { %v1162_v26 = vadd.f32 %v1756_v25, %v2889_v10  ;;  %v1757_v27 = vpop.f32.mrb[40].mxu1  ;;  %1860 = vmatprep.mubr.f32.mxu0 %v1227_v24  ;;  %v2910_v25 = vld [vmem:[%s3029_s1 + $0x1d4] ss:$0 sm:$0xff] }
 0x384   : > { %v1758_v30 = vpop.f32.mrb[41].mxu1 }
 0x385   : > { %v1228_v31 = vmax.f32 %v1162_v26, 0.0  ;;  %v1759_v32 = vadd.f32 %v1758_v30, %v1757_v27 }
 0x387   : > { %v1167_v33 = vadd.f32 %v1759_v32, %v2889_v10  ;;  %v1760_v34 = vpop.f32.mrb[42].mxu1  ;;  %1861 = vmatmul.mubr.f32.gmra.mrb[66].mxu0 %v1228_v31  ;;  %v2917_v32 = vld [vmem:[%s3029_s1 + $0x1d5] ss:$0 sm:$0xff] }
 0x388   : > { %v1761_v35 = vpop.f32.mrb[43].mxu1 }
 0x389   : > { %v1229_v36 = vmax.f32 %v1167_v33, 0.0  ;;  %v1762_v37 = vadd.f32 %v1761_v35, %v1760_v34 }
 0x38b   : > { %v1172_v40 = vadd.f32 %v1762_v37, %v2889_v10  ;;  %v1763_v41 = vpop.f32.mrb[44].mxu1  ;;  %1863 = vmatprep.mubr.f32.mxu0 %v1229_v36 }
 0x38c   : > { %v1764_v3 = vpop.f32.mrb[45].mxu1 }
 0x38d   : > { %v1230_v42 = vmax.f32 %v1172_v40, 0.0  ;;  %v1765_v5 = vadd.f32 %v1764_v3, %v1763_v41 }
 0x38f   : > { %v1177_v43 = vadd.f32 %v1765_v5, %v2889_v10  ;;  %v1766_v44 = vpop.f32.mrb[46].mxu1  ;;  %1864 = vmatmul.mubr.f32.gmra.mrb[68].mxu0 %v1230_v42 }
 0x390   : > { %v1767_v45 = vpop.f32.mrb[47].mxu1 }
 0x391   : > { %v1231_v46 = vmax.f32 %v1177_v43, 0.0  ;;  %v1768_v47 = vadd.f32 %v1767_v45, %v1766_v44 }
 0x393   : > { %v1182_v6 = vadd.f32 %v1768_v47, %v2889_v10  ;;  %v1769_v8 = vpop.f32.mrb[48].mxu1  ;;  %1866 = vmatprep.mubr.f32.mxu0 %v1231_v46 }
 0x394   : > { %v1770_v48 = vpop.f32.mrb[49].mxu1 }
 0x395   : > { %v1232_v49 = vmax.f32 %v1182_v6, 0.0  ;;  %v1771_v50 = vadd.f32 %v1770_v48, %v1769_v8 }
 0x397   : > { %v1187_v51 = vadd.f32 %v1771_v50, %v2889_v10  ;;  %v1772_v52 = vpop.f32.mrb[50].mxu1  ;;  %1867 = vmatmul.mubr.f32.gmra.mrb[70].mxu0 %v1232_v49 }
 0x398   : > { %v1773_v53 = vpop.f32.mrb[51].mxu1 }
 0x399   : > { %v1233_v54 = vmax.f32 %v1187_v51, 0.0  ;;  %v1774_v55 = vadd.f32 %v1773_v53, %v1772_v52 }
 0x39b   : > { %v1192_v56 = vadd.f32 %v1774_v55, %v2889_v10  ;;  %v1775_v57 = vpop.f32.mrb[52].mxu1  ;;  %1869 = vmatprep.mubr.f32.mxu0 %v1233_v54 }
 0x39c   : > { %v1776_v58 = vpop.f32.mrb[53].mxu1 }
 0x39d   : > { %v1234_v7 = vmax.f32 %v1192_v56, 0.0  ;;  %v1777_v59 = vadd.f32 %v1776_v58, %v1775_v57 }
 0x39f   : > { %v1197_v60 = vadd.f32 %v1777_v59, %v2889_v10  ;;  %v1778_v61 = vpop.f32.mrb[54].mxu1  ;;  %1870 = vmatmul.mubr.f32.gmra.mrb[72].mxu0 %v1234_v7 }
 0x3a0   : > { %v1779_v62 = vpop.f32.mrb[55].mxu1 }
 0x3a1   : > { %v1235_v63 = vmax.f32 %v1197_v60, 0.0  ;;  %v1780_v28 = vadd.f32 %v1779_v62, %v1778_v61 }
 0x3a3   : > { %v1202_v29 = vadd.f32 %v1780_v28, %v2889_v10  ;;  %v1781_v0 = vpop.f32.mrb[56].mxu1  ;;  %1872 = vmatprep.mubr.f32.mxu0 %v1235_v63 }
 0x3a4   : > { %v1782_v1 = vpop.f32.mrb[57].mxu1 }
 0x3a5   : > { %v1236_v2 = vmax.f32 %v1202_v29, 0.0  ;;  %v1783_v4 = vadd.f32 %v1782_v1, %v1781_v0 }
 0x3a7   : > { %v1207_v9 = vadd.f32 %v1783_v4, %v2889_v10  ;;  %v1784_v11 = vpop.f32.mrb[58].mxu1  ;;  %1873 = vmatmul.mubr.f32.gmra.mrb[74].mxu0 %v1236_v2 }
 0x3a8   : > { %v1785_v12 = vpop.f32.mrb[59].mxu1 }
 0x3a9   : > { %v1237_v13 = vmax.f32 %v1207_v9, 0.0  ;;  %v1786_v14 = vadd.f32 %v1785_v12, %v1784_v11 }
 0x3ab   : > { %v1212_v15 = vadd.f32 %v1786_v14, %v2889_v10  ;;  %v1787_v38 = vpop.f32.mrb[60].mxu1  ;;  %1875 = vmatprep.mubr.f32.mxu0 %v1237_v13 }
 0x3ac   : > { %v1788_v39 = vpop.f32.mrb[61].mxu1 }
 0x3ad   : > { %v1238_v16 = vmax.f32 %v1212_v15, 0.0  ;;  %v1789_v17 = vadd.f32 %v1788_v39, %v1787_v38 }
 0x3af   : > { %v1217_v18 = vadd.f32 %v1789_v17, %v2889_v10  ;;  %v1790_v19 = vpop.f32.mrb[62].mxu1  ;;  %1876 = vmatmul.mubr.f32.gmra.mrb[76].mxu0 %v1238_v16 }
 0x3b0   : > { %v1791_v20 = vpop.f32.mrb[63].mxu1 }
 0x3b1   : > { %v1239_v21 = vmax.f32 %v1217_v18, 0.0  ;;  %v1792_v22 = vadd.f32 %v1791_v20, %v1790_v19 }
 0x3b3   : > { %v1222_v23 = vadd.f32 %v1792_v22, %v2889_v10  ;;  %1878 = vmatprep.mubr.f32.mxu0 %v1239_v21 }
 0x3b5   : > { %v1240_v24 = vmax.f32 %v1222_v23, 0.0 }
 0x3b7   : > { %1879 = vmatmul.mubr.f32.gmra.mrb[78].mxu0 %v1240_v24 }
 0x452   : > { %v1859_v26 = vpop.f32.mrb[64].mxu0 }
 0x453   : > { %v1313_v27 = vadd.f32 %v1859_v26, %v2910_v25  ;;  %v1307_v30 = vpop.f32.mrb[65].mxu0 }
 0x454   : > { %v1308_v31 = vadd.f32 %v1307_v30, %v2910_v25 }
 0x455   : > { %v1387_v10 = vmax.f32 %v1313_v27, 0.0 }
 0x456   : > { %v1386_v33 = vmax.f32 %v1308_v31, 0.0 }
 0x457   : > { %v1403_v34 = vmul.f32 %v1387_v10, %v2917_v32 }
 0x458   : > { %v1402_v36 = vmul.f32 %v1386_v33, %v2917_v32 }
 0x459   : > { %v1421_v35 = vsel %vm838_vm1, %v1403_v34, 0.0 }
 0x45a   : > { %1422 = vadd.xlane.f32.xlu0 %v1421_v35  ;;  %v1862_v37 = vpop.f32.mrb[66].mxu0  ;;  %v1418_v5 = vsel %vm838_vm1, %v1402_v36, 0.0 }
 0x45b   : > { %v1323_v40 = vadd.f32 %v1862_v37, %v2910_v25  ;;  %v1317_v41 = vpop.f32.mrb[67].mxu0 }
 0x45c   : > { %v1318_v3 = vadd.f32 %v1317_v41, %v2910_v25 }
 0x45d   : > { %v1389_v42 = vmax.f32 %v1323_v40, 0.0 }
 0x45e   : > { %v1388_v43 = vmax.f32 %v1318_v3, 0.0  ;;  %1419 = vadd.xlane.f32.xlu0 %v1418_v5 }
 0x45f   : > { %v1405_v44 = vmul.f32 %v1389_v42, %v2917_v32 }
 0x460   : > { %v1404_v46 = vmul.f32 %v1388_v43, %v2917_v32 }
 0x461   : > { %v1427_v45 = vsel %vm838_vm1, %v1405_v44, 0.0 }
 0x462   : > { %1428 = vadd.xlane.f32.xlu1 %v1427_v45  ;;  %v1865_v47 = vpop.f32.mrb[68].mxu0  ;;  %v1424_v50 = vsel %vm838_vm1, %v1404_v46, 0.0  ;;  %v2968_v46 = vld [vmem:[%s3029_s1 + $0x1d6] ss:$0 sm:$0xff] }
 0x463   : > { %v1333_v6 = vadd.f32 %v1865_v47, %v2910_v25  ;;  %v1327_v8 = vpop.f32.mrb[69].mxu0 }
 0x464   : > { %v1328_v48 = vadd.f32 %v1327_v8, %v2910_v25 }
 0x465   : > { %v1391_v49 = vmax.f32 %v1333_v6, 0.0 }
 0x466   : > { %v1390_v51 = vmax.f32 %v1328_v48, 0.0  ;;  %1425 = vadd.xlane.f32.xlu1 %v1424_v50 }
 0x467   : > { %v1407_v52 = vmul.f32 %v1391_v49, %v2917_v32 }
 0x468   : > { %v1406_v53 = vmul.f32 %v1390_v51, %v2917_v32 }
 0x469   : > { %v1433_v54 = vsel %vm838_vm1, %v1407_v52, 0.0 }
 0x46a   : > { %v1868_v55 = vpop.f32.mrb[70].mxu0  ;;  %1434 = vadd.xlane.f32.xlu1 %v1433_v54  ;;  %v1430_v56 = vsel %vm838_vm1, %v1406_v53, 0.0 }
 0x46b   : > { %v1343_v57 = vadd.f32 %v1868_v55, %v2910_v25  ;;  %v1337_v58 = vpop.f32.mrb[71].mxu0  ;;  %1431 = vadd.xlane.f32.xlu0 %v1430_v56 }
 0x46c   : > { %v1338_v7 = vadd.f32 %v1337_v58, %v2910_v25 }
 0x46d   : > { %v1393_v59 = vmax.f32 %v1343_v57, 0.0 }
 0x46e   : > { %v1392_v60 = vmax.f32 %v1338_v7, 0.0 }
 0x46f   : > { %v1409_v61 = vmul.f32 %v1393_v59, %v2917_v32 }
 0x470   : > { %v1408_v62 = vmul.f32 %v1392_v60, %v2917_v32 }
 0x471   : > { %v1439_v63 = vsel %vm838_vm1, %v1409_v61, 0.0 }
 0x472   : > { %v1871_v28 = vpop.f32.mrb[72].mxu0  ;;  %1440 = vadd.xlane.f32.xlu1 %v1439_v63  ;;  %v1436_v29 = vsel %vm838_vm1, %v1408_v62, 0.0 }
 0x473   : > { %v1353_v0 = vadd.f32 %v1871_v28, %v2910_v25  ;;  %v1347_v1 = vpop.f32.mrb[73].mxu0  ;;  %1437 = vadd.xlane.f32.xlu0 %v1436_v29 }
 0x474   : > { %v1348_v2 = vadd.f32 %v1347_v1, %v2910_v25 }
 0x475   : > { %v1395_v4 = vmax.f32 %v1353_v0, 0.0 }
 0x476   : > { %v1394_v9 = vmax.f32 %v1348_v2, 0.0 }
 0x477   : > { %v1411_v11 = vmul.f32 %v1395_v4, %v2917_v32 }
 0x478   : > { %v1410_v12 = vmul.f32 %v1394_v9, %v2917_v32 }
 0x479   : > { %v1445_v13 = vsel %vm838_vm1, %v1411_v11, 0.0 }
 0x47a   : > { %v1874_v14 = vpop.f32.mrb[74].mxu0  ;;  %1446 = vadd.xlane.f32.xlu1 %v1445_v13  ;;  %v1442_v15 = vsel %vm838_vm1, %v1410_v12, 0.0 }
 0x47b   : > { %v1363_v38 = vadd.f32 %v1874_v14, %v2910_v25  ;;  %v1357_v39 = vpop.f32.mrb[75].mxu0  ;;  %1443 = vadd.xlane.f32.xlu0 %v1442_v15 }
 0x47c   : > { %v1358_v16 = vadd.f32 %v1357_v39, %v2910_v25 }
 0x47d   : > { %v1397_v17 = vmax.f32 %v1363_v38, 0.0 }
 0x47e   : > { %v1396_v18 = vmax.f32 %v1358_v16, 0.0 }
 0x47f   : > { %v1413_v19 = vmul.f32 %v1397_v17, %v2917_v32 }
 0x480   : > { %v1412_v20 = vmul.f32 %v1396_v18, %v2917_v32 }
 0x481   : > { %v1451_v21 = vsel %vm838_vm1, %v1413_v19, 0.0 }
 0x482   : > { %v1877_v22 = vpop.f32.mrb[76].mxu0  ;;  %1452 = vadd.xlane.f32.xlu1 %v1451_v21  ;;  %v1448_v23 = vsel %vm838_vm1, %v1412_v20, 0.0 }
 0x483   : > { %v1373_v24 = vadd.f32 %v1877_v22, %v2910_v25  ;;  %v1367_v26 = vpop.f32.mrb[77].mxu0  ;;  %1449 = vadd.xlane.f32.xlu0 %v1448_v23 }
 0x484   : > { %v1368_v27 = vadd.f32 %v1367_v26, %v2910_v25 }
 0x485   : > { %v1399_v30 = vmax.f32 %v1373_v24, 0.0 }
 0x486   : > { %v1398_v31 = vmax.f32 %v1368_v27, 0.0 }
 0x487   : > { %v1415_v10 = vmul.f32 %v1399_v30, %v2917_v32 }
 0x488   : > { %v1414_v33 = vmul.f32 %v1398_v31, %v2917_v32 }
 0x489   : > { %v1457_v34 = vsel %vm838_vm1, %v1415_v10, 0.0 }
 0x48a   : > { %v1880_v35 = vpop.f32.mrb[78].mxu0  ;;  %1458 = vadd.xlane.f32.xlu1 %v1457_v34  ;;  %v1454_v36 = vsel %vm838_vm1, %v1414_v33, 0.0 }
 0x48b   : > { %v1383_v37 = vadd.f32 %v1880_v35, %v2910_v25  ;;  %v1377_v40 = vpop.f32.mrb[79].mxu0  ;;  %1455 = vadd.xlane.f32.xlu0 %v1454_v36 }
 0x48c   : > { %v1378_v41 = vadd.f32 %v1377_v40, %v2910_v25 }
 0x48d   : > { %v1401_v3 = vmax.f32 %v1383_v37, 0.0 }
 0x48e   : > { %v1400_v42 = vmax.f32 %v1378_v41, 0.0 }
 0x48f   : > { %v1417_v5 = vmul.f32 %v1401_v3, %v2917_v32 }
 0x490   : > { %v1416_v43 = vmul.f32 %v1400_v42, %v2917_v32 }
 0x491   : > { %v1463_v44 = vsel %vm838_vm1, %v1417_v5, 0.0 }
 0x492   : > { %1464 = vadd.xlane.f32.xlu1 %v1463_v44  ;;  %v1460_v45 = vsel %vm838_vm1, %v1416_v43, 0.0 }
 0x493   : > { %1461 = vadd.xlane.f32.xlu0 %v1460_v45 }
 0x4e7   : > { %v1423_v47 = vpop.xlane.xlu0 %1422 }
 0x4e8   : > { %v1467_v25 = vadd.f32 %v1423_v47, %v2968_v46 }
 0x4ea   : > { %v1696_v6 = vmul.f32 -1.442695, %v1467_v25 }
 0x4eb   : > { %v1420_v8 = vpop.xlane.xlu0 %1419 }
 0x4ec   : > { %2074 = vpow2.f32 %v1696_v6  ;;  %v1466_v48 = vadd.f32 %v1420_v8, %v2968_v46 }
 0x4ee   : > { %v1695_v32 = vmul.f32 -1.442695, %v1466_v48 }
 0x4ef   : > { %v1429_v49 = vpop.xlane.xlu1 %1428 }
 0x4f0   : > { %2076 = vpow2.f32 %v1695_v32  ;;  %v1469_v50 = vadd.f32 %v1429_v49, %v2968_v46 }
 0x4f2   : > { %v1698_v51 = vmul.f32 -1.442695, %v1469_v50 }
 0x4f3   : > { %v1426_v52 = vpop.xlane.xlu1 %1425 }
 0x4f4   : > { %2078 = vpow2.f32 %v1698_v51  ;;  %v1468_v53 = vadd.f32 %v1426_v52, %v2968_v46 }
 0x4f6   : > { %v2075_v54 = vpop.eup %2074  ;;  %v1697_v55 = vmul.f32 -1.442695, %v1468_v53 }
 0x4f7   : > { %v1531_v56 = vadd.f32 1.0, %v2075_v54  ;;  %v1435_v57 = vpop.xlane.xlu1 %1434 }
 0x4f8   : > { %2080 = vpow2.f32 %v1697_v55  ;;  %v1471_v58 = vadd.f32 %v1435_v57, %v2968_v46  ;;  %v1432_v7 = vpop.xlane.xlu0 %1431 }
 0x4f9   : > { %2082 = vrcp.f32 %v1531_v56  ;;  %v1470_v59 = vadd.f32 %v1432_v7, %v2968_v46 }
 0x4fa   : > { %v2077_v60 = vpop.eup %2076  ;;  %v1700_v61 = vmul.f32 -1.442695, %v1471_v58 }
 0x4fb   : > { %v1530_v62 = vadd.f32 1.0, %v2077_v60  ;;  %v1699_v63 = vmul.f32 -1.442695, %v1470_v59 }
 0x4fc   : > { %2084 = vpow2.f32 %v1700_v61 }
 0x4fd   : > { %2086 = vrcp.f32 %v1530_v62 }
 0x4fe   : > { %v2079_v28 = vpop.eup %2078  ;;  %2088 = vpow2.f32 %v1699_v63 }
 0x4ff   : > { %v1533_v29 = vadd.f32 1.0, %v2079_v28  ;;  %v1441_v0 = vpop.xlane.xlu1 %1440 }
 0x500   : > { %v1473_v1 = vadd.f32 %v1441_v0, %v2968_v46  ;;  %v1438_v2 = vpop.xlane.xlu0 %1437 }
 0x501   : > { %2090 = vrcp.f32 %v1533_v29  ;;  %v1472_v4 = vadd.f32 %v1438_v2, %v2968_v46 }
 0x502   : > { %v2081_v9 = vpop.eup %2080  ;;  %v1702_v11 = vmul.f32 -1.442695, %v1473_v1 }
 0x503   : > { %v2083_v12 = vpop.eup %2082  ;;  %v1532_v13 = vadd.f32 1.0, %v2081_v9  ;;  %v1701_v14 = vmul.f32 -1.442695, %v1472_v4 }
 0x504   : > { %1580 = vst.msk [vmem:[%s2982_s17 + $0x8] sm:$0xff] %vm1578_vm2, %v2083_v12  ;;  %2092 = vpow2.f32 %v1702_v11 }
 0x505   : > { %2094 = vrcp.f32 %v1532_v13 }
 0x506   : > { %v2085_v15 = vpop.eup %2084  ;;  %2096 = vpow2.f32 %v1701_v14 }
 0x507   : > { %v2087_v38 = vpop.eup %2086  ;;  %v1535_v39 = vadd.f32 1.0, %v2085_v15  ;;  %v1447_v16 = vpop.xlane.xlu1 %1446 }
 0x508   : > { %v2089_v17 = vpop.eup %2088  ;;  %1579 = vst.msk [vmem:[%s2982_s17] sm:$0xff] %vm1578_vm2, %v2087_v38  ;;  %v1475_v18 = vadd.f32 %v1447_v16, %v2968_v46  ;;  %v1444_v19 = vpop.xlane.xlu0 %1443 }
 0x509   : > { %2098 = vrcp.f32 %v1535_v39  ;;  %v1534_v20 = vadd.f32 1.0, %v2089_v17  ;;  %v1474_v21 = vadd.f32 %v1444_v19, %v2968_v46 }
 0x50a   : > { %v1704_v22 = vmul.f32 -1.442695, %v1475_v18 }
 0x50b   : > { %v2091_v23 = vpop.eup %2090  ;;  %2100 = vrcp.f32 %v1534_v20  ;;  %v1703_v24 = vmul.f32 -1.442695, %v1474_v21 }
 0x50c   : > { %1582 = vst.msk [vmem:[%s2982_s17 + $0x18] sm:$0xff] %vm1578_vm2, %v2091_v23  ;;  %2102 = vpow2.f32 %v1704_v22 }
 0x50d   : > { %2104 = vpow2.f32 %v1703_v24 }
 0x50e   : > { %v2093_v26 = vpop.eup %2092 }
 0x50f   : > { %v2095_v27 = vpop.eup %2094  ;;  %v1537_v30 = vadd.f32 1.0, %v2093_v26  ;;  %v1453_v31 = vpop.xlane.xlu1 %1452 }
 0x510   : > { %v2097_v10 = vpop.eup %2096  ;;  %1581 = vst.msk [vmem:[%s2982_s17 + $0x10] sm:$0xff] %vm1578_vm2, %v2095_v27  ;;  %v1477_v33 = vadd.f32 %v1453_v31, %v2968_v46  ;;  %v1450_v34 = vpop.xlane.xlu0 %1449 }
 0x511   : > { %2106 = vrcp.f32 %v1537_v30  ;;  %v1536_v35 = vadd.f32 1.0, %v2097_v10  ;;  %v1476_v36 = vadd.f32 %v1450_v34, %v2968_v46 }
 0x512   : > { %v1706_v37 = vmul.f32 -1.442695, %v1477_v33 }
 0x513   : > { %v2099_v40 = vpop.eup %2098  ;;  %2108 = vrcp.f32 %v1536_v35  ;;  %v1705_v41 = vmul.f32 -1.442695, %v1476_v36 }
 0x514   : > { %1584 = vst.msk [vmem:[%s2982_s17 + $0x28] sm:$0xff] %vm1578_vm2, %v2099_v40  ;;  %2110 = vpow2.f32 %v1706_v37 }
 0x515   : > { %v2101_v3 = vpop.eup %2100  ;;  %2112 = vpow2.f32 %v1705_v41 }
 0x516   : > { %v2103_v42 = vpop.eup %2102  ;;  %1583 = vst.msk [vmem:[%s2982_s17 + $0x20] sm:$0xff] %vm1578_vm2, %v2101_v3 }
 0x517   : > { %v2105_v5 = vpop.eup %2104  ;;  %v1539_v43 = vadd.f32 1.0, %v2103_v42  ;;  %v1459_v44 = vpop.xlane.xlu1 %1458 }
 0x518   : > { %v1538_v45 = vadd.f32 1.0, %v2105_v5  ;;  %v1479_v47 = vadd.f32 %v1459_v44, %v2968_v46  ;;  %v1456_v25 = vpop.xlane.xlu0 %1455 }
 0x519   : > { %2114 = vrcp.f32 %v1539_v43  ;;  %v1478_v6 = vadd.f32 %v1456_v25, %v2968_v46 }
 0x51a   : > { %2116 = vrcp.f32 %v1538_v45  ;;  %v1708_v8 = vmul.f32 -1.442695, %v1479_v47 }
 0x51b   : > { %v2107_v48 = vpop.eup %2106  ;;  %v1707_v32 = vmul.f32 -1.442695, %v1478_v6 }
 0x51c   : > { %1586 = vst.msk [vmem:[%s2982_s17 + $0x38] sm:$0xff] %vm1578_vm2, %v2107_v48  ;;  %2118 = vpow2.f32 %v1708_v8 }
 0x51d   : > { %v2109_v49 = vpop.eup %2108  ;;  %2120 = vpow2.f32 %v1707_v32 }
 0x51e   : > { %v2111_v50 = vpop.eup %2110  ;;  %1585 = vst.msk [vmem:[%s2982_s17 + $0x30] sm:$0xff] %vm1578_vm2, %v2109_v49 }
 0x51f   : > { %v2113_v51 = vpop.eup %2112  ;;  %v1541_v52 = vadd.f32 1.0, %v2111_v50  ;;  %v1465_v53 = vpop.xlane.xlu1 %1464 }
 0x520   : > { %v1540_v54 = vadd.f32 1.0, %v2113_v51  ;;  %v1481_v55 = vadd.f32 %v1465_v53, %v2968_v46  ;;  %v1462_v56 = vpop.xlane.xlu0 %1461 }
 0x521   : > { %2122 = vrcp.f32 %v1541_v52  ;;  %v1480_v57 = vadd.f32 %v1462_v56, %v2968_v46 }
 0x522   : > { %2124 = vrcp.f32 %v1540_v54  ;;  %v1710_v58 = vmul.f32 -1.442695, %v1481_v55 }
 0x523   : > { %v2115_v7 = vpop.eup %2114  ;;  %v1709_v59 = vmul.f32 -1.442695, %v1480_v57 }
 0x524   : > { %v2117_v60 = vpop.eup %2116  ;;  %1588 = vst.msk [vmem:[%s2982_s17 + $0x48] sm:$0xff] %vm1578_vm2, %v2115_v7  ;;  %2126 = vpow2.f32 %v1710_v58 }
 0x525   : > { %1587 = vst.msk [vmem:[%s2982_s17 + $0x40] sm:$0xff] %vm1578_vm2, %v2117_v60  ;;  %2128 = vpow2.f32 %v1709_v59 }
 0x526   : > { %v2119_v61 = vpop.eup %2118 }
 0x527   : > { %v2121_v62 = vpop.eup %2120  ;;  %v1543_v63 = vadd.f32 1.0, %v2119_v61 }
 0x528   : > { %v1542_v28 = vadd.f32 1.0, %v2121_v62 }
 0x529   : > { %2130 = vrcp.f32 %v1543_v63 }
 0x52a   : > { %2132 = vrcp.f32 %v1542_v28 }
 0x52b   : > { %v2123_v46 = vpop.eup %2122 }
 0x52c   : > { %v2125_v29 = vpop.eup %2124  ;;  %1590 = vst.msk [vmem:[%s2982_s17 + $0x58] sm:$0xff] %vm1578_vm2, %v2123_v46 }
 0x52d   : > { %1589 = vst.msk [vmem:[%s2982_s17 + $0x50] sm:$0xff] %vm1578_vm2, %v2125_v29 }
 0x52e   : > { %v2127_v0 = vpop.eup %2126 }
 0x52f   : > { %v2129_v1 = vpop.eup %2128  ;;  %v1545_v2 = vadd.f32 1.0, %v2127_v0 }
 0x530   : > { %v1544_v4 = vadd.f32 1.0, %v2129_v1 }
 0x531   : > { %2134 = vrcp.f32 %v1545_v2 }
 0x532   : > { %2136 = vrcp.f32 %v1544_v4 }
 0x533   : > { %v2131_v9 = vpop.eup %2130 }
 0x534   : > { %v2133_v11 = vpop.eup %2132  ;;  %1592 = vst.msk [vmem:[%s2982_s17 + $0x68] sm:$0xff] %vm1578_vm2, %v2131_v9 }
 0x535   : > { %1591 = vst.msk [vmem:[%s2982_s17 + $0x60] sm:$0xff] %vm1578_vm2, %v2133_v11 }
 0x53b   : > { %v2135_v12 = vpop.eup %2134 }
 0x53c   : > { %v2137_v13 = vpop.eup %2136  ;;  %1594 = vst.msk [vmem:[%s2982_s17 + $0x78] sm:$0xff] %vm1578_vm2, %v2135_v12 }
 0x53d   : > { %1593 = vst.msk [vmem:[%s2982_s17 + $0x70] sm:$0xff] %vm1578_vm2, %v2137_v13 }
 0x53e PF: > { %s13_s12 = sadd.s32 1, %s2144_s12  }
 0x53f   : > { %p10_p4 = scmp.ge.s32.totalorder %s13_s12, 4  }
 0x541   :  { %12 = sbr.rel (!%p10_p4) target bundleno = 1 (0x1), region = 65 }

</bundles_post_ra>
